<compile_context>
chip_gen: v7x
topology: tpu7x:2x2x1
jax: 0.10.0
libtpu: 0.0.40
codegen_flags: <defaults>
</compile_context>

<pallas_src>
import functools

import jax
import jax.numpy as jnp
import numpy as np
from jax import lax
from jax.experimental import pallas as pl
from jax.experimental.pallas import tpu as pltpu


def _cross_attention_kernel(q_ref, kv_ref, gamma_ref, beta_ref, wk_ref, wv_ref, o_ref,
                            *, num_heads, head_dim, eps):
    """Processes one batch element (grid axis 0 = batch index).

    q_ref     : (1, N, H)  query hidden states
    kv_ref    : (1, M, H)  key/value hidden states
    gamma_ref : (1, H)     LayerNorm weight
    beta_ref  : (1, H)     LayerNorm bias (zeros buffer in the torch module)
    wk_ref    : (H, H)     key projection weight (already transposed: x @ Wk)
    wv_ref    : (H, H)     value projection weight (already transposed: x @ Wv)
    o_ref     : (1, N, H)  output
    """
    q = q_ref[0]                      # (N, H) f32
    kv = kv_ref[0]                    # (M, H) f32
    gamma = gamma_ref[...]            # (1, H)
    beta = beta_ref[...]              # (1, H)

    # ---- LayerNorm over the hidden dim (VPU/EUP) ----
    mu = jnp.mean(q, axis=-1, keepdims=True)
    xc = q - mu
    var = jnp.mean(xc * xc, axis=-1, keepdims=True)
    qn = xc * lax.rsqrt(var + eps) * gamma + beta        # (N, H)

    # ---- fused KV projection, no bias (MXU) ----
    k = jnp.dot(kv, wk_ref[...], preferred_element_type=jnp.float32,
                precision=lax.Precision.HIGHEST)          # (M, H)
    v = jnp.dot(kv, wv_ref[...], preferred_element_type=jnp.float32,
                precision=lax.Precision.HIGHEST)          # (M, H)

    # query scaling (value.size(-1) ** -0.5 == head_dim ** -0.5)
    qn = qn * (head_dim ** -0.5)

    n = qn.shape[0]
    m = k.shape[0]
    row = lax.broadcasted_iota(jnp.int32, (n, m), 0)
    col = lax.broadcasted_iota(jnp.int32, (n, m), 1)
    masked = col > row                                    # triu(diagonal=1)
    neg = jnp.float32(-jnp.finfo(jnp.float32).max)

    # ---- per-head attention (num_heads is small & static) ----
    head_outs = []
    for h in range(num_heads):
        s = h * head_dim
        qh = qn[:, s:s + head_dim]                        # (N, d)
        kh = k[:, s:s + head_dim]                         # (M, d)
        vh = v[:, s:s + head_dim]                         # (M, d)

        # sim = qh @ kh^T  (contraction on the head dim, no explicit transpose)
        sim = lax.dot_general(qh, kh, (((1,), (1,)), ((), ())),
                              preferred_element_type=jnp.float32,
                              precision=lax.Precision.HIGHEST)       # (N, M)
        sim = jnp.where(masked, neg, sim)

        # numerically-stable softmax over keys
        mrow = jnp.max(sim, axis=-1, keepdims=True)
        e = jnp.exp(sim - mrow)
        attn = e * pl.reciprocal(jnp.sum(e, axis=-1, keepdims=True), approx=False)

        head_outs.append(jnp.dot(attn, vh, preferred_element_type=jnp.float32,
                                 precision=lax.Precision.HIGHEST))   # (N, d)

    # single lane-dense store: 'b h n d -> b n (h d)'
    o_ref[0] = jnp.concatenate(head_outs, axis=-1).astype(o_ref.dtype)


def cross_attention_forward(query, key_value, fused_proj_weight, gamma, beta,
                            *, num_heads, eps=1e-5):
    """query: (B, N, H); key_value: (B, M, H); fused_proj_weight: (2H, H) torch layout;
    gamma/beta: (H,)."""
    B, N, H = query.shape
    _, M, Hkv = key_value.shape
    assert Hkv == H and H % num_heads == 0
    head_dim = H // num_heads

    w = jnp.asarray(fused_proj_weight, jnp.float32)
    wk_t = w[:H].T                                        # (H, H): kv @ wk_t == kv @ Wk.T
    wv_t = w[H:].T                                        # (H, H)
    g2 = jnp.asarray(gamma, jnp.float32).reshape(1, H)
    b2 = jnp.asarray(beta, jnp.float32).reshape(1, H)

    kernel = functools.partial(_cross_attention_kernel,
                               num_heads=num_heads, head_dim=head_dim, eps=eps)

    grid_spec = pltpu.PrefetchScalarGridSpec(
        num_scalar_prefetch=0,
        grid=(B,),
        in_specs=[
            pl.BlockSpec((1, N, H), lambda b: (b, 0, 0)),     # query
            pl.BlockSpec((1, M, H), lambda b: (b, 0, 0)),     # key_value
            pl.BlockSpec((1, H), lambda b: (0, 0)),           # gamma (VMEM-resident)
            pl.BlockSpec((1, H), lambda b: (0, 0)),           # beta
            pl.BlockSpec((H, H), lambda b: (0, 0)),           # Wk^T
            pl.BlockSpec((H, H), lambda b: (0, 0)),           # Wv^T
        ],
        out_specs=pl.BlockSpec((1, N, H), lambda b: (b, 0, 0)),
    )

    return pl.pallas_call(
        kernel,
        out_shape=jax.ShapeDtypeStruct((B, N, H), query.dtype),
        grid_spec=grid_spec,
        compiler_params=pltpu.CompilerParams(
            dimension_semantics=("parallel",)),
    )(jnp.asarray(query, jnp.float32), jnp.asarray(key_value, jnp.float32),
      g2, b2, wk_t, wv_t)


def _reference(query, key_value, fused_proj_weight, gamma, beta, *, num_heads, eps=1e-5):
    """Pure-JAX reference mirroring the torch forward."""
    B, N, H = query.shape
    M = key_value.shape[1]
    d = H // num_heads

    mu = jnp.mean(query, axis=-1, keepdims=True)
    var = jnp.mean((query - mu) ** 2, axis=-1, keepdims=True)
    qn = (query - mu) / jnp.sqrt(var + eps) * gamma + beta

    proj = jnp.einsum("bmh,oh->bmo", key_value, fused_proj_weight, precision="highest")
    k, v = proj[..., :H], proj[..., H:]

    qh = qn.reshape(B, N, num_heads, d).transpose(0, 2, 1, 3)
    kh = k.reshape(B, M, num_heads, d).transpose(0, 2, 1, 3)
    vh = v.reshape(B, M, num_heads, d).transpose(0, 2, 1, 3)

    sim = jnp.einsum("bhnd,bhmd->bhnm", qh * (d ** -0.5), kh, precision="highest")
    mask = jnp.triu(jnp.ones((N, M), dtype=bool), 1)
    sim = jnp.where(mask, -jnp.finfo(sim.dtype).max, sim)
    attn = jax.nn.softmax(sim, axis=-1)
    out = jnp.einsum("bhnm,bhmd->bhnd", attn, vh, precision="highest")
    return out.transpose(0, 2, 1, 3).reshape(B, N, H)


if __name__ == "__main__":
    # Small CrossAttention-shaped config: batch=2, query seq=16, kv seq=16,
    # hidden=128 (lane-dense), num_heads=4 -> head_dim=32, split_head=True.
    B, N, M, HIDDEN, HEADS = 2, 16, 16, 128, 4

    key = jax.random.PRNGKey(0)
    kq, kkv, kw, kg = jax.random.split(key, 4)
    query = jax.random.normal(kq, (B, N, HIDDEN), dtype=jnp.float32)
    key_value = jax.random.normal(kkv, (B, M, HIDDEN), dtype=jnp.float32)
    # nn.Linear(hidden, 2*hidden, bias=False) weight in torch layout (2H, H).
    fused_w = jax.random.normal(kw, (2 * HIDDEN, HIDDEN), dtype=jnp.float32) * (1.0 / np.sqrt(HIDDEN))
    # LayerNorm: gamma is a learnable parameter (perturb it so the test is meaningful),
    # beta is a zeros buffer in the module.
    gamma = jnp.ones((HIDDEN,), jnp.float32) + 0.1 * jax.random.normal(kg, (HIDDEN,), jnp.float32)
    beta = jnp.zeros((HIDDEN,), jnp.float32)

    out = cross_attention_forward(query, key_value, fused_w, gamma, beta, num_heads=HEADS)
    jax.block_until_ready(out)

    ref = _reference(query, key_value, fused_w, gamma, beta, num_heads=HEADS)
    np.testing.assert_allclose(np.asarray(out), np.asarray(ref), rtol=1e-3, atol=1e-3)

    print("KERNEL_OK")
</pallas_src>

<mosaic_0001>
module attributes {stable_mosaic.version = 11 : i64} {
  func.func @_cross_attention_kernel(%arg0: i32, %arg1: memref<1x16x128xf32, #tpu.memory_space<vmem>>, %arg2: memref<1x16x128xf32, #tpu.memory_space<vmem>>, %arg3: memref<1x128xf32, #tpu.memory_space<vmem>>, %arg4: memref<1x128xf32, #tpu.memory_space<vmem>>, %arg5: memref<128x128xf32, #tpu.memory_space<vmem>>, %arg6: memref<128x128xf32, #tpu.memory_space<vmem>>, %arg7: memref<1x16x128xf32, #tpu.memory_space<vmem>>) attributes {dimension_semantics = [#tpu.dimension_semantics<parallel>], iteration_bounds = array<i64: 2>, scalar_prefetch = 0 : i64, scratch_operands = 0 : i64, tpu.core_type = #tpu.core_type<tc>, window_params = [{transform_indices = @transform_0, window_bounds = array<i64: 1, 16, 128>}, {transform_indices = @transform_1, window_bounds = array<i64: 1, 16, 128>}, {pipeline_mode = #tpu.pipeline_mode<synchronous>, transform_indices = @transform_2, window_bounds = array<i64: 1, 128>}, {pipeline_mode = #tpu.pipeline_mode<synchronous>, transform_indices = @transform_3, window_bounds = array<i64: 1, 128>}, {pipeline_mode = #tpu.pipeline_mode<synchronous>, transform_indices = @transform_4, window_bounds = array<i64: 128, 128>}, {pipeline_mode = #tpu.pipeline_mode<synchronous>, transform_indices = @transform_5, window_bounds = array<i64: 128, 128>}, {transform_indices = @transform_6, window_bounds = array<i64: 1, 16, 128>}]} {
    %c0 = arith.constant 0 : index
    %c0_0 = arith.constant 0 : index
    %c0_1 = arith.constant 0 : index
    %0 = vector.load %arg1[%c0, %c0_0, %c0_1] : memref<1x16x128xf32, #tpu.memory_space<vmem>>, vector<1x16x128xf32>
    %1 = vector.shape_cast %0 : vector<1x16x128xf32> to vector<16x128xf32>
    %c0_2 = arith.constant 0 : index
    %c0_3 = arith.constant 0 : index
    %c0_4 = arith.constant 0 : index
    %2 = vector.load %arg2[%c0_2, %c0_3, %c0_4] : memref<1x16x128xf32, #tpu.memory_space<vmem>>, vector<1x16x128xf32>
    %3 = vector.shape_cast %2 : vector<1x16x128xf32> to vector<16x128xf32>
    %c0_5 = arith.constant 0 : index
    %c0_6 = arith.constant 0 : index
    %4 = vector.load %arg3[%c0_5, %c0_6] : memref<1x128xf32, #tpu.memory_space<vmem>>, vector<1x128xf32>
    %c0_7 = arith.constant 0 : index
    %c0_8 = arith.constant 0 : index
    %5 = vector.load %arg4[%c0_7, %c0_8] : memref<1x128xf32, #tpu.memory_space<vmem>>, vector<1x128xf32>
    %cst = arith.constant dense<0.000000e+00> : vector<16xf32>
    %6 = vector.multi_reduction <add>, %1, %cst [1] : vector<16x128xf32> to vector<16xf32>
    %7 = vector.shape_cast %6 : vector<16xf32> to vector<16x1xf32>
    %cst_9 = arith.constant 1.280000e+02 : f32
    %8 = vector.broadcast %cst_9 : f32 to vector<16x1xf32>
    %9 = arith.divf %7, %8 : vector<16x1xf32>
    %10 = vector.broadcast %9 : vector<16x1xf32> to vector<16x128xf32>
    %11 = arith.subf %1, %10 : vector<16x128xf32>
    %12 = arith.mulf %11, %11 : vector<16x128xf32>
    %cst_10 = arith.constant dense<0.000000e+00> : vector<16xf32>
    %13 = vector.multi_reduction <add>, %12, %cst_10 [1] : vector<16x128xf32> to vector<16xf32>
    %14 = vector.shape_cast %13 : vector<16xf32> to vector<16x1xf32>
    %cst_11 = arith.constant 1.280000e+02 : f32
    %15 = vector.broadcast %cst_11 : f32 to vector<16x1xf32>
    %16 = arith.divf %14, %15 : vector<16x1xf32>
    %cst_12 = arith.constant 9.99999974E-6 : f32
    %17 = vector.broadcast %cst_12 : f32 to vector<16x1xf32>
    %18 = arith.addf %16, %17 : vector<16x1xf32>
    %19 = math.rsqrt %18 : vector<16x1xf32>
    %20 = vector.broadcast %19 : vector<16x1xf32> to vector<16x128xf32>
    %21 = arith.mulf %11, %20 : vector<16x128xf32>
    %22 = vector.broadcast %4 : vector<1x128xf32> to vector<16x128xf32>
    %23 = arith.mulf %21, %22 : vector<16x128xf32>
    %24 = vector.broadcast %5 : vector<1x128xf32> to vector<16x128xf32>
    %25 = arith.addf %23, %24 : vector<16x128xf32>
    %c0_13 = arith.constant 0 : index
    %c0_14 = arith.constant 0 : index
    %26 = vector.load %arg5[%c0_13, %c0_14] : memref<128x128xf32, #tpu.memory_space<vmem>>, vector<128x128xf32>
    %cst_15 = arith.constant dense<0.000000e+00> : vector<16x128xf32>
    %27 = tpu.matmul %3, %26, %cst_15 {dimension_numbers = #tpu.dot_dimension_numbers<[1], [0], [0], [1], [0, 0, 1, 1], [], []>, precision = #tpu.contract_precision<fp32>} : vector<16x128xf32>, vector<128x128xf32>, vector<16x128xf32> -> vector<16x128xf32>
    %c0_16 = arith.constant 0 : index
    %c0_17 = arith.constant 0 : index
    %28 = vector.load %arg6[%c0_16, %c0_17] : memref<128x128xf32, #tpu.memory_space<vmem>>, vector<128x128xf32>
    %cst_18 = arith.constant dense<0.000000e+00> : vector<16x128xf32>
    %29 = tpu.matmul %3, %28, %cst_18 {dimension_numbers = #tpu.dot_dimension_numbers<[1], [0], [0], [1], [0, 0, 1, 1], [], []>, precision = #tpu.contract_precision<fp32>} : vector<16x128xf32>, vector<128x128xf32>, vector<16x128xf32> -> vector<16x128xf32>
    %cst_19 = arith.constant 0.176776692 : f32
    %30 = vector.broadcast %cst_19 : f32 to vector<16x128xf32>
    %31 = arith.mulf %25, %30 : vector<16x128xf32>
    %32 = tpu.iota {dimensions = array<i32: 0>} : vector<16x16xi32>
    %33 = tpu.iota {dimensions = array<i32: 1>} : vector<16x16xi32>
    %34 = arith.cmpi sgt, %33, %32 : vector<16x16xi32>
    %35 = vector.extract_strided_slice %31 {offsets = [0, 0], sizes = [16, 32], strides = [1, 1]} : vector<16x128xf32> to vector<16x32xf32>
    %36 = vector.extract_strided_slice %27 {offsets = [0, 0], sizes = [16, 32], strides = [1, 1]} : vector<16x128xf32> to vector<16x32xf32>
    %37 = vector.extract_strided_slice %29 {offsets = [0, 0], sizes = [16, 32], strides = [1, 1]} : vector<16x128xf32> to vector<16x32xf32>
    %cst_20 = arith.constant dense<0.000000e+00> : vector<16x16xf32>
    %38 = tpu.matmul %35, %36, %cst_20 {dimension_numbers = #tpu.dot_dimension_numbers<[1], [1], [0], [0], [0, 0, 1, 0], [], []>, precision = #tpu.contract_precision<fp32>} : vector<16x32xf32>, vector<16x32xf32>, vector<16x16xf32> -> vector<16x16xf32>
    %cst_21 = arith.constant -3.40282347E+38 : f32
    %39 = vector.broadcast %cst_21 : f32 to vector<16x16xf32>
    %40 = arith.select %34, %39, %38 : vector<16x16xi1>, vector<16x16xf32>
    %cst_22 = arith.constant dense<0xFF800000> : vector<16xf32>
    %41 = vector.multi_reduction <maximumf>, %40, %cst_22 [1] : vector<16x16xf32> to vector<16xf32>
    %42 = vector.shape_cast %41 : vector<16xf32> to vector<16x1xf32>
    %43 = vector.broadcast %42 : vector<16x1xf32> to vector<16x16xf32>
    %44 = arith.subf %40, %43 : vector<16x16xf32>
    %45 = math.exp %44 : vector<16x16xf32>
    %cst_23 = arith.constant dense<0.000000e+00> : vector<16xf32>
    %46 = vector.multi_reduction <add>, %45, %cst_23 [1] : vector<16x16xf32> to vector<16xf32>
    %47 = vector.shape_cast %46 : vector<16xf32> to vector<16x1xf32>
    %48 = tpu.reciprocal %47 : vector<16x1xf32> -> vector<16x1xf32>
    %49 = vector.broadcast %48 : vector<16x1xf32> to vector<16x16xf32>
    %50 = arith.mulf %45, %49 : vector<16x16xf32>
    %cst_24 = arith.constant dense<0.000000e+00> : vector<16x32xf32>
    %51 = tpu.matmul %50, %37, %cst_24 {dimension_numbers = #tpu.dot_dimension_numbers<[1], [0], [0], [1], [0, 0, 1, 1], [], []>, precision = #tpu.contract_precision<fp32>} : vector<16x16xf32>, vector<16x32xf32>, vector<16x32xf32> -> vector<16x32xf32>
    %52 = vector.extract_strided_slice %31 {offsets = [0, 32], sizes = [16, 32], strides = [1, 1]} : vector<16x128xf32> to vector<16x32xf32>
    %53 = vector.extract_strided_slice %27 {offsets = [0, 32], sizes = [16, 32], strides = [1, 1]} : vector<16x128xf32> to vector<16x32xf32>
    %54 = vector.extract_strided_slice %29 {offsets = [0, 32], sizes = [16, 32], strides = [1, 1]} : vector<16x128xf32> to vector<16x32xf32>
    %cst_25 = arith.constant dense<0.000000e+00> : vector<16x16xf32>
    %55 = tpu.matmul %52, %53, %cst_25 {dimension_numbers = #tpu.dot_dimension_numbers<[1], [1], [0], [0], [0, 0, 1, 0], [], []>, precision = #tpu.contract_precision<fp32>} : vector<16x32xf32>, vector<16x32xf32>, vector<16x16xf32> -> vector<16x16xf32>
    %cst_26 = arith.constant -3.40282347E+38 : f32
    %56 = vector.broadcast %cst_26 : f32 to vector<16x16xf32>
    %57 = arith.select %34, %56, %55 : vector<16x16xi1>, vector<16x16xf32>
    %cst_27 = arith.constant dense<0xFF800000> : vector<16xf32>
    %58 = vector.multi_reduction <maximumf>, %57, %cst_27 [1] : vector<16x16xf32> to vector<16xf32>
    %59 = vector.shape_cast %58 : vector<16xf32> to vector<16x1xf32>
    %60 = vector.broadcast %59 : vector<16x1xf32> to vector<16x16xf32>
    %61 = arith.subf %57, %60 : vector<16x16xf32>
    %62 = math.exp %61 : vector<16x16xf32>
    %cst_28 = arith.constant dense<0.000000e+00> : vector<16xf32>
    %63 = vector.multi_reduction <add>, %62, %cst_28 [1] : vector<16x16xf32> to vector<16xf32>
    %64 = vector.shape_cast %63 : vector<16xf32> to vector<16x1xf32>
    %65 = tpu.reciprocal %64 : vector<16x1xf32> -> vector<16x1xf32>
    %66 = vector.broadcast %65 : vector<16x1xf32> to vector<16x16xf32>
    %67 = arith.mulf %62, %66 : vector<16x16xf32>
    %cst_29 = arith.constant dense<0.000000e+00> : vector<16x32xf32>
    %68 = tpu.matmul %67, %54, %cst_29 {dimension_numbers = #tpu.dot_dimension_numbers<[1], [0], [0], [1], [0, 0, 1, 1], [], []>, precision = #tpu.contract_precision<fp32>} : vector<16x16xf32>, vector<16x32xf32>, vector<16x32xf32> -> vector<16x32xf32>
    %69 = vector.extract_strided_slice %31 {offsets = [0, 64], sizes = [16, 32], strides = [1, 1]} : vector<16x128xf32> to vector<16x32xf32>
    %70 = vector.extract_strided_slice %27 {offsets = [0, 64], sizes = [16, 32], strides = [1, 1]} : vector<16x128xf32> to vector<16x32xf32>
    %71 = vector.extract_strided_slice %29 {offsets = [0, 64], sizes = [16, 32], strides = [1, 1]} : vector<16x128xf32> to vector<16x32xf32>
    %cst_30 = arith.constant dense<0.000000e+00> : vector<16x16xf32>
    %72 = tpu.matmul %69, %70, %cst_30 {dimension_numbers = #tpu.dot_dimension_numbers<[1], [1], [0], [0], [0, 0, 1, 0], [], []>, precision = #tpu.contract_precision<fp32>} : vector<16x32xf32>, vector<16x32xf32>, vector<16x16xf32> -> vector<16x16xf32>
    %cst_31 = arith.constant -3.40282347E+38 : f32
    %73 = vector.broadcast %cst_31 : f32 to vector<16x16xf32>
    %74 = arith.select %34, %73, %72 : vector<16x16xi1>, vector<16x16xf32>
    %cst_32 = arith.constant dense<0xFF800000> : vector<16xf32>
    %75 = vector.multi_reduction <maximumf>, %74, %cst_32 [1] : vector<16x16xf32> to vector<16xf32>
    %76 = vector.shape_cast %75 : vector<16xf32> to vector<16x1xf32>
    %77 = vector.broadcast %76 : vector<16x1xf32> to vector<16x16xf32>
    %78 = arith.subf %74, %77 : vector<16x16xf32>
    %79 = math.exp %78 : vector<16x16xf32>
    %cst_33 = arith.constant dense<0.000000e+00> : vector<16xf32>
    %80 = vector.multi_reduction <add>, %79, %cst_33 [1] : vector<16x16xf32> to vector<16xf32>
    %81 = vector.shape_cast %80 : vector<16xf32> to vector<16x1xf32>
    %82 = tpu.reciprocal %81 : vector<16x1xf32> -> vector<16x1xf32>
    %83 = vector.broadcast %82 : vector<16x1xf32> to vector<16x16xf32>
    %84 = arith.mulf %79, %83 : vector<16x16xf32>
    %cst_34 = arith.constant dense<0.000000e+00> : vector<16x32xf32>
    %85 = tpu.matmul %84, %71, %cst_34 {dimension_numbers = #tpu.dot_dimension_numbers<[1], [0], [0], [1], [0, 0, 1, 1], [], []>, precision = #tpu.contract_precision<fp32>} : vector<16x16xf32>, vector<16x32xf32>, vector<16x32xf32> -> vector<16x32xf32>
    %86 = vector.extract_strided_slice %31 {offsets = [0, 96], sizes = [16, 32], strides = [1, 1]} : vector<16x128xf32> to vector<16x32xf32>
    %87 = vector.extract_strided_slice %27 {offsets = [0, 96], sizes = [16, 32], strides = [1, 1]} : vector<16x128xf32> to vector<16x32xf32>
    %88 = vector.extract_strided_slice %29 {offsets = [0, 96], sizes = [16, 32], strides = [1, 1]} : vector<16x128xf32> to vector<16x32xf32>
    %cst_35 = arith.constant dense<0.000000e+00> : vector<16x16xf32>
    %89 = tpu.matmul %86, %87, %cst_35 {dimension_numbers = #tpu.dot_dimension_numbers<[1], [1], [0], [0], [0, 0, 1, 0], [], []>, precision = #tpu.contract_precision<fp32>} : vector<16x32xf32>, vector<16x32xf32>, vector<16x16xf32> -> vector<16x16xf32>
    %cst_36 = arith.constant -3.40282347E+38 : f32
    %90 = vector.broadcast %cst_36 : f32 to vector<16x16xf32>
    %91 = arith.select %34, %90, %89 : vector<16x16xi1>, vector<16x16xf32>
    %cst_37 = arith.constant dense<0xFF800000> : vector<16xf32>
    %92 = vector.multi_reduction <maximumf>, %91, %cst_37 [1] : vector<16x16xf32> to vector<16xf32>
    %93 = vector.shape_cast %92 : vector<16xf32> to vector<16x1xf32>
    %94 = vector.broadcast %93 : vector<16x1xf32> to vector<16x16xf32>
    %95 = arith.subf %91, %94 : vector<16x16xf32>
    %96 = math.exp %95 : vector<16x16xf32>
    %cst_38 = arith.constant dense<0.000000e+00> : vector<16xf32>
    %97 = vector.multi_reduction <add>, %96, %cst_38 [1] : vector<16x16xf32> to vector<16xf32>
    %98 = vector.shape_cast %97 : vector<16xf32> to vector<16x1xf32>
    %99 = tpu.reciprocal %98 : vector<16x1xf32> -> vector<16x1xf32>
    %100 = vector.broadcast %99 : vector<16x1xf32> to vector<16x16xf32>
    %101 = arith.mulf %96, %100 : vector<16x16xf32>
    %cst_39 = arith.constant dense<0.000000e+00> : vector<16x32xf32>
    %102 = tpu.matmul %101, %88, %cst_39 {dimension_numbers = #tpu.dot_dimension_numbers<[1], [0], [0], [1], [0, 0, 1, 1], [], []>, precision = #tpu.contract_precision<fp32>} : vector<16x16xf32>, vector<16x32xf32>, vector<16x32xf32> -> vector<16x32xf32>
    %103 = tpu.concatenate %51, %68, %85, %102 in 1 : vector<16x32xf32>, vector<16x32xf32>, vector<16x32xf32>, vector<16x32xf32> -> vector<16x128xf32>
    %c0_40 = arith.constant 0 : index
    %c0_41 = arith.constant 0 : index
    %c0_42 = arith.constant 0 : index
    %104 = vector.load %arg7[%c0_40, %c0_41, %c0_42] : memref<1x16x128xf32, #tpu.memory_space<vmem>>, vector<1x16x128xf32>
    %105 = vector.shape_cast %104 : vector<1x16x128xf32> to vector<16x128xf32>
    %106 = vector.shape_cast %103 : vector<16x128xf32> to vector<1x16x128xf32>
    tpu.vector_store %arg7[%c0_40, %c0_41, %c0_42], %106 {strides = array<i32>} : memref<1x16x128xf32, #tpu.memory_space<vmem>>, vector<1x16x128xf32>,
    return
  }
  func.func @transform_0(%arg0: i32) -> (i32, i32, i32) {
    %c0_i32 = arith.constant 0 : i32
    %c0_i32_0 = arith.constant 0 : i32
    %c0_i32_1 = arith.constant 0 : i32
    return %arg0, %c0_i32, %c0_i32_0 : i32, i32, i32
  }
  func.func @transform_1(%arg0: i32) -> (i32, i32, i32) {
    %c0_i32 = arith.constant 0 : i32
    %c0_i32_0 = arith.constant 0 : i32
    %c0_i32_1 = arith.constant 0 : i32
    return %arg0, %c0_i32, %c0_i32_0 : i32, i32, i32
  }
  func.func @transform_2(%arg0: i32) -> (i32, i32) {
    %c0_i32 = arith.constant 0 : i32
    %c0_i32_0 = arith.constant 0 : i32
    %c0_i32_1 = arith.constant 0 : i32
    return %c0_i32, %c0_i32_0 : i32, i32
  }
  func.func @transform_3(%arg0: i32) -> (i32, i32) {
    %c0_i32 = arith.constant 0 : i32
    %c0_i32_0 = arith.constant 0 : i32
    %c0_i32_1 = arith.constant 0 : i32
    return %c0_i32, %c0_i32_0 : i32, i32
  }
  func.func @transform_4(%arg0: i32) -> (i32, i32) {
    %c0_i32 = arith.constant 0 : i32
    %c0_i32_0 = arith.constant 0 : i32
    %c0_i32_1 = arith.constant 0 : i32
    return %c0_i32, %c0_i32_0 : i32, i32
  }
  func.func @transform_5(%arg0: i32) -> (i32, i32) {
    %c0_i32 = arith.constant 0 : i32
    %c0_i32_0 = arith.constant 0 : i32
    %c0_i32_1 = arith.constant 0 : i32
    return %c0_i32, %c0_i32_0 : i32, i32
  }
  func.func @transform_6(%arg0: i32) -> (i32, i32, i32) {
    %c0_i32 = arith.constant 0 : i32
    %c0_i32_0 = arith.constant 0 : i32
    %c0_i32_1 = arith.constant 0 : i32
    return %arg0, %c0_i32, %c0_i32_0 : i32, i32, i32
  }
}

</mosaic_0001>

<bundles_post_ra>
// kernel: tpu_custom_call.1
= control target key start
LH: loop header
LB: loop body
LE: loop exit
PB: predicated region body
PF: predicated region fallthrough
CT: control target
= control target key end

     0   :  { %s9473_s0 = inlined_call_operand.hbm [shape: f32[2,16,128], index: 0, kind: input, shape index: {}]   ;;  %s9474_s1 = inlined_call_operand.hbm [shape: f32[2,16,128], index: 1, kind: input, shape index: {}]   ;;  %s9475_s2 = inlined_call_operand.vmem [shape: f32[1,128], index: 2, kind: input, shape index: {}]   ;;  %s9476_s3 = inlined_call_operand.vmem [shape: f32[1,128], index: 3, kind: input, shape index: {}]   ;;  %s9477_s4 = inlined_call_operand.hbm [shape: f32[128,128], index: 4, kind: input, shape index: {}]   ;;  %s9478_s5 = inlined_call_operand.hbm [shape: f32[128,128], index: 5, kind: input, shape index: {}]   ;;  %s9479_s6 = inlined_call_operand.hbm [shape: f32[2,16,128], index: 6, kind: output, shape index: {}]  }
   0x1   :  { %9497 = sst [smem:[#allocation18_spill]] %s9473_s0 }
   0x2   :  { %9498 = sst [smem:[#allocation19_spill]] %s9477_s4 }
   0x3   :  { %9499 = sst [smem:[#allocation20_spill]] %s9478_s5 }
   0x4   :  { %11 = vsyncpa [#allocation3], 0 }
   0x5   :  { %13 = vsyncpa [#allocation3 + $0x1], 0 }
   0x6   :  { %14 = vsyncpa [#allocation6], 0 }
   0x7   :  { %16 = vsyncpa [#allocation6 + $0x1], 0 }
   0x8   :  { %17 = vsyncpa [#allocation9], 0 }
   0x9   :  { %18 = vsyncpa [#allocation4], 0 }
   0xa   :  { %20 = vsyncpa [#allocation4 + $0x1], 0  ;;  %s8399_s21 = smov 0   ;;  %s8401_s22 = smov 0  }
   0xb   :  { %s8403_s23 = smov 0   ;;  %s8405_s24 = smov 0  }
   0xc LB: > { %s8420_s25 = sadd.s32 4294967295, %s8350_s24   ;;  %s6174_s26 = sadd.s32 4294967294, %s8350_s24   ;;  %s8350_s24 = sphi %s8405_s24, %s9534_s24   ;;  %s8346_s23 = sphi %s8403_s23, %s9533_s23   ;;  %s8342_s22 = sphi %s8401_s22, %s9532_s22   ;;  %s8338_s21 = sphi %s8399_s21, %s9531_s21  }
   0xd   : > { %p46_p0 = scmp.ne.s32.totalorder %s8342_s22, %s8338_s21  ;;  %p9480_p1 = scmp.eq.s32.totalorder %s8420_s25, 0 }
   0xe   : > { %p186_p3 = scmp.eq.s32.totalorder %s6174_s26, 1  ;;  %p6175_p5 = scmp.ge.s32.totalorder %s8350_s24, 1 }
   0xf   : > { %p8429_p4 = por %p9480_p1, %p46_p0  ;;  %p193_p7 = scmp.lt.s32.totalorder %s8350_s24, 3 }
  0x10   : > { %p8434_p6 = por %p186_p3, %p46_p0  ;;  %s8352_s30 = smov [#allocation7]  }
  0x11   : > { %s9500_s27 = scalar_select %p8429_p4, 1, 0 }
  0x12   : > { %s9501_s28 = scalar_select %p8434_p6, 1, 0 }
  0x13   : > { %p8439_p8 = pnand %p6175_p5, %p193_p7  ;;  %s211_s7 = sshll.u32 %s8352_s30, 4  ;;  %s8443_s7 = int_to_ptr.vmem [resolvable:$true] %s211_s7 }
  0x14   : > { %s8353_s9 = smov [#allocation8]   ;;  %s9504_s4 = sld [smem:[#allocation19_spill]] }
  0x15   : > { %p8055_p9 = pneg %p8439_p8  ;;  %s224_s10 = sshll.u32 %s8353_s9, 4  ;;  %s8454_s10 = int_to_ptr.vmem [resolvable:$true] %s224_s10 }
  0x17   : > { %p8450_p11 = pnand %p8055_p9, %p9480_p1 }
  0x19   : > { %p8158_p13 = pneg %p8450_p11 }
  0x1a   : > { %s8156_s13 = scalar_lea.hbm %s9504_s4, 2048 }
  0x1b   : > { %p8157_p12 = scmp.ne.s32.totalorder %s9504_s4, %s8156_s13  ;;  %p8163_p5 = scmp.lt.u32.totalorder %s8156_s13, %s9504_s4 }
  0x1d   : > { %p8159_p0 = pnand %p8158_p13, %p8157_p12 }
  0x1f   : > { %p8160_p3 = pneg %p8159_p0 }
  0x21   : > { %p8165_p7 = pnand %p8163_p5, %p8160_p3 }
  0x23   : > { %8168 = shalt.err (!%p8165_p7)
}
  0x24   : > { %s8169_s18 = scalar_lea.vmem %s8443_s7, 2048  ;;  %p8177_p2 = scmp.lt.s32.totalorder %s8443_s7, %s8443_s7 }
  0x25   : > { %p8170_p9 = scmp.ne.s32.totalorder %s8443_s7, %s8169_s18  ;;  %p8178_p12 = scmp.lt.s32.totalorder %s8169_s18, %s8169_s18 }
  0x27   : > { %p8172_p10 = pnand %p8170_p9, %p8158_p13  ;;  %p8179_p0 = por %p8178_p12, %p8177_p2 }
  0x29   : > { %p8173_p1 = pneg %p8172_p10 }
  0x2b   : > { %p8180_p6 = pnand %p8179_p0, %p8173_p1 }
  0x2d   : > { %8183 = shalt.err (!%p8180_p6)
}
  0x2e   : > { %s9481_s19 = smov 128   ;;  %s9483_s20 = smov 8  }
  0x2f   : > { %8058 = dma.hbm_to_vmem [thread:$0]  (!%p8450_p11), %s9504_s4, 2048, %s8443_s7, [#allocation6], %s9481_s19, %s9481_s19, %s9483_s20  }
  0x30   : > { %s9505_s5 = sld [smem:[#allocation20_spill]] }
  0x36   : > { %s8184_s12 = scalar_lea.hbm %s9505_s5, 2048 }
  0x37   : > { %p8185_p1 = scmp.ne.s32.totalorder %s9505_s5, %s8184_s12  ;;  %p8191_p10 = scmp.lt.u32.totalorder %s8184_s12, %s9505_s5 }
  0x39   : > { %p8187_p2 = pnand %p8185_p1, %p8158_p13 }
  0x3b   : > { %p8188_p6 = pneg %p8187_p2 }
  0x3d   : > { %p8193_p3 = pnand %p8191_p10, %p8188_p6 }
  0x3f   : > { %8196 = shalt.err (!%p8193_p3)
}
  0x40   : > { %s8197_s7 = scalar_lea.vmem %s8454_s10, 2048  ;;  %p8205_p12 = scmp.lt.s32.totalorder %s8454_s10, %s8454_s10 }
  0x41   : > { %p8198_p5 = scmp.ne.s32.totalorder %s8454_s10, %s8197_s7  ;;  %p8206_p0 = scmp.lt.s32.totalorder %s8197_s7, %s8197_s7 }
  0x43   : > { %p8200_p7 = pnand %p8198_p5, %p8158_p13  ;;  %p8207_p1 = por %p8206_p0, %p8205_p12 }
  0x45   : > { %p8201_p9 = pneg %p8200_p7 }
  0x47   : > { %p8208_p2 = pnand %p8207_p1, %p8201_p9 }
  0x49   : > { %8211 = shalt.err (!%p8208_p2)
}
  0x4a   : > { %8061 = dma.hbm_to_vmem [thread:$0]  (!%p8450_p11), %s9505_s5, 2048, %s8454_s10, [#allocation9], %s9481_s19, %s9481_s19, %s9483_s20  }
  0x4b   : > { %s8515_s8 = sadd.s32 1, %s8350_s24   ;;  %s33_s26 = sadd.s32 1, %s8346_s23 }
  0x4c   : > { %s30_s30 = ssub.s32 %s8350_s24, %s8515_s8  ;;  %p40_p13 = scmp.ne.s32.totalorder %s8346_s23, %s8342_s22 }
  0x4d   : > { %p31_p6 = scmp.eq.s32.totalorder %s30_s30, 0  ;;  %p41_p10 = scmp.eq.s32.totalorder %s8350_s24, 0 }
  0x4e   : > { %p9506_p3 = scmp.eq.s32.totalorder %s8420_s25, 1  ;;  %p8075_p7 = scmp.lt.s32.totalorder %s8350_s24, 2 }
  0x4f   : > { %s8531_s11 = scalar_select %p31_p6, %s8346_s23, %s33_s26  }
  0x50   : > { %p8525_p5 = por %p9506_p3, %p40_p13  ;;  %p42_p9 = por %p41_p10, %p40_p13 }
  0x51   : > { %s238_s12 = sand.u32 1, %s8346_s23   ;;  %s6198_s10 = sshll.u32 %s8350_s24, 8 }
  0x52   : > { %s9507_s9 = scalar_select %p8525_p5, 1, 0 }
  0x53   : > { %s6179_s13 = sshll.u32 %s238_s12, 4  ;;  %s9508_s0 = sld [smem:[#allocation18_spill]] }
  0x54   : > { %s242_s7 = scalar_lea.vmem [#allocation2], %s6179_s13  ;;  %p8542_p11 = pnand %p8075_p7, %p42_p9 }
  0x55   : > { %s249_s17 = sshll.u32 %s242_s7, 4  ;;  %s8549_s14 = scalar_lea.hbm %s9474_s1, %s6198_s10  ;;  %s8540_s17 = int_to_ptr.vmem [resolvable:$true] %s249_s17 }
  0x56   : > { %s263_s15 = scalar_lea.vmem [#allocation5], %s6179_s13  ;;  %s8553_s20 = scalar_lea.sflag [#allocation3], %s238_s12 }
  0x57   : > { %s8551_s19 = sshll.u32 %s263_s15, 4  ;;  %p8214_p0 = pneg %p8542_p11  ;;  %s8585_s19 = int_to_ptr.vmem [resolvable:$true] %s8551_s19 }
  0x59   : > { %s8538_s16 = scalar_lea.hbm %s9508_s0, %s6198_s10  ;;  %s8217_s26 = scalar_lea.hbm %s9508_s0, 512 }
  0x5a   : > { %s8212_s7 = scalar_lea.hbm %s8538_s16, 256  ;;  %p8218_p13 = scmp.lt.u32.totalorder %s8538_s16, %s9508_s0 }
  0x5b   : > { %p8213_p12 = scmp.ne.s32.totalorder %s8538_s16, %s8212_s7  ;;  %p8219_p6 = scmp.lt.u32.totalorder %s8217_s26, %s8212_s7 }
  0x5c   : > { %p8221_p3 = scmp.lt.u32.totalorder %s8212_s7, %s8538_s16 }
  0x5d   : > { %p8215_p1 = pnand %p8214_p0, %p8213_p12  ;;  %p8220_p10 = por %p8219_p6, %p8218_p13 }
  0x5f   : > { %p8216_p2 = pneg %p8215_p1  ;;  %p8222_p7 = por %p8221_p3, %p8220_p10 }
  0x61   : > { %p8223_p9 = pnand %p8222_p7, %p8216_p2 }
  0x63   : > { %8226 = shalt.err (!%p8223_p9)
}
  0x64   : > { %s8227_s12 = scalar_lea.vmem %s8540_s17, 256  ;;  %s8356_s4 = smov [#allocation2]  }
  0x65   : > { %p8228_p12 = scmp.ne.s32.totalorder %s8540_s17, %s8227_s12  ;;  %s8232_s5 = sshll.u32 %s8356_s4, 4  ;;  %s8233_s5 = int_to_ptr.vmem [resolvable:$false] %s8232_s5 }
  0x66   : > { %s8234_s13 = scalar_lea.vmem %s8233_s5, 512  ;;  %p8235_p4 = scmp.lt.s32.totalorder %s8540_s17, %s8233_s5 }
  0x67   : > { %p8230_p1 = pnand %p8228_p12, %p8214_p0  ;;  %p8236_p13 = scmp.lt.s32.totalorder %s8234_s13, %s8227_s12 }
  0x69   : > { %p8231_p5 = pneg %p8230_p1  ;;  %p8237_p6 = por %p8236_p13, %p8235_p4 }
  0x6b   : > { %p8238_p10 = pnand %p8237_p6, %p8231_p5 }
  0x6d   : > { %8241 = shalt.err (!%p8238_p10)
}
  0x6e   : > { %s9510_s15 = smov 8   ;;  %s9511_s7 = smov 128  }
  0x6f   : > { %8065 = dma.hbm_to_vmem [thread:$0]  (!%p8542_p11), %s8538_s16, 256, %s8540_s17, %s8553_s20, %s9511_s7, %s9511_s7, %s9510_s15  }
  0x70   : > { %s259_s26 = sand.u32 1, %s8350_s24   ;;  %s8242_s10 = scalar_lea.hbm %s8549_s14, 256 }
  0x71   : > { %s8588_s30 = scalar_lea.sflag [#allocation6], %s259_s26  ;;  %p8243_p4 = scmp.ne.s32.totalorder %s8549_s14, %s8242_s10 }
  0x72   : > { %s8247_s5 = scalar_lea.hbm %s9474_s1, 512  ;;  %p8248_p3 = scmp.lt.u32.totalorder %s8549_s14, %s9474_s1 }
  0x73   : > { %p8245_p5 = pnand %p8243_p4, %p8214_p0  ;;  %p8249_p7 = scmp.lt.u32.totalorder %s8247_s5, %s8242_s10 }
  0x74   : > { %p8251_p12 = scmp.lt.u32.totalorder %s8242_s10, %s8549_s14 }
  0x75   : > { %p8246_p2 = pneg %p8245_p5  ;;  %p8250_p9 = por %p8249_p7, %p8248_p3 }
  0x77   : > { %p8252_p1 = por %p8251_p12, %p8250_p9 }
  0x79   : > { %p8253_p13 = pnand %p8252_p1, %p8246_p2 }
  0x7b   : > { %8256 = shalt.err (!%p8253_p13)
}
  0x7c   : > { %s8257_s20 = scalar_lea.vmem %s8585_s19, 256  ;;  %s8357_s16 = smov [#allocation5]  }
  0x7d   : > { %p8258_p6 = scmp.ne.s32.totalorder %s8585_s19, %s8257_s20  ;;  %s8262_s17 = sshll.u32 %s8357_s16, 4  ;;  %s8263_s17 = int_to_ptr.vmem [resolvable:$false] %s8262_s17 }
  0x7e   : > { %s8264_s0 = scalar_lea.vmem %s8263_s17, 512  ;;  %p8265_p5 = scmp.lt.s32.totalorder %s8585_s19, %s8263_s17 }
  0x7f   : > { %p8260_p10 = pnand %p8258_p6, %p8214_p0  ;;  %p8266_p3 = scmp.lt.s32.totalorder %s8264_s0, %s8257_s20 }
  0x81   : > { %p8261_p4 = pneg %p8260_p10  ;;  %p8267_p7 = por %p8266_p3, %p8265_p5 }
  0x83   : > { %p8268_p9 = pnand %p8267_p7, %p8261_p4 }
  0x85   : > { %8271 = shalt.err (!%p8268_p9)
}
  0x86   : > { %8068 = dma.hbm_to_vmem [thread:$0]  (!%p8542_p11), %s8549_s14, 256, %s8585_s19, %s8588_s30, %s9511_s7, %s9511_s7, %s9510_s15  }
  0x87   : > { %282 = sbr.rel (%p8439_p8) target bundleno = 3439 (0xd6f), region = 44 }
  0x8e   : > { %s8620_s26 = sand.u32 1, %s8342_s22   ;;  %p9512_p0 = scmp.ne.s32.totalorder %s9500_s27, 0 }
  0x8f   : > { %s8623_s10 = sshll.u32 %s8620_s26, 4  ;;  %s285_s18 = scalar_lea.sflag [#allocation3], %s8620_s26 }
  0x90   : > { %s288_s12 = scalar_lea.vmem [#allocation2], %s8623_s10 }
  0x91   : > { %8317 = dma.done.wait (%p9512_p0), %s285_s18, 256  }
  0x92   : > { %8319 = vsyncadd (%p9512_p0), %s285_s18, 4294967040  ;;  %s293_s29 = sand.u32 1, %s8420_s25   ;;  %s297_s14 = scalar_lea.vmem [#allocation5], %s8623_s10 }
  0x93   : > { %s294_s19 = scalar_lea.sflag [#allocation6], %s293_s29 }
  0x94   : > { %8321 = dma.done.wait (%p9512_p0), %s294_s19, 256  }
  0x95   : > { %8323 = vsyncadd (%p9512_p0), %s294_s19, 4294967040  ;;  %p9513_p8 = scmp.eq.s32.totalorder %s8420_s25, 0 }
  0x97   : > { %8325 = dma.done.wait (%p9513_p8), [#allocation6], 2048   ;;  %p9514_p11 = pmov %p9513_p8 }
  0x98   : > { %p9515_p2 = pmov %p9513_p8 }
  0x99   : > { %8327 = vsyncadd (%p9514_p11), [#allocation6], 4294965248 }
  0x9a   : > { %8329 = dma.done.wait (%p9515_p2), [#allocation9], 2048   ;;  %p9516_p12 = pmov %p9515_p2 }
  0x9b   : > { %v8645_v0 = vld [vmem:[%s288_s12] sm:$0xff]  ;;  %v385_v2 = vld [vmem:[#allocation7 + $0x8] sm:$0xff]  ;;  %v387_v6 = vld [vmem:[#allocation7 + $0x18] sm:$0xff]  ;;  %vm1793_vm0 = vcmask 261120   ;;  %vm2310_vm3 = vcmask 130048   ;;  %s8358_s4 = smov 96  }
  0x9c   : > { %8331 = vsyncadd (%p9516_p12), [#allocation9], 4294965248  ;;  %v384_v1 = vld [vmem:[#allocation7] sm:$0xff]  ;;  %345 = vadd.xlane.f32.xlu0 %v8645_v0  ;;  %v404_v4 = vand.u32 4294901760, %v385_v2  ;;  %v386_v5 = vld [vmem:[#allocation7 + $0x10] sm:$0xff]  ;;  %v410_v9 = vand.u32 4294901760, %v387_v6 }
  0x9d   : > { %v401_v3 = vand.u32 4294901760, %v384_v1  ;;  %v8648_v7 = vld [vmem:[%s288_s12 + $0x8] sm:$0xff]  ;;  %v407_v8 = vand.u32 4294901760, %v386_v5  ;;  %v388_v10 = vld [vmem:[#allocation7 + $0x20] sm:$0xff]  ;;  %v8654_v16 = vld [vmem:[#allocation7 + $0x30] sm:$0xff]  ;;  %s8359_s5 = smov 64  }
  0x9e   : > { %9517 = vst [vmem:[#allocation16_spill] sm:$0xff] %v8648_v7  ;;  %v389_v11 = vld [vmem:[#allocation7 + $0x28] sm:$0xff]  ;;  %v413_v13 = vand.u32 4294901760, %v388_v10  ;;  %v8656_v17 = vld [vmem:[#allocation7 + $0x38] sm:$0xff]  ;;  %v341_v18 = vld [vmem:[%s297_s14] sm:$0xff]  ;;  %v419_v20 = vand.u32 4294901760, %v8654_v16  ;;  %v8686_v36 = vsub.f32 %v385_v2, %v404_v4  ;;  %v8697_v47 = vsub.f32 %v387_v6, %v410_v9 }
  0x9f   : > { %v8650_v12 = vpack.c.bf16 %v404_v4, %v401_v3  ;;  %v416_v14 = vand.u32 4294901760, %v389_v11  ;;  %v8652_v15 = vpack.c.bf16 %v410_v9, %v407_v8  ;;  %v422_v21 = vand.u32 4294901760, %v8656_v17  ;;  %v392_v23 = vld [vmem:[#allocation7 + $0x40] sm:$0xff]  ;;  %v393_v24 = vld [vmem:[#allocation7 + $0x48] sm:$0xff]  ;;  %v394_v30 = vld [vmem:[#allocation7 + $0x50] sm:$0xff]  ;;  %s8360_s13 = smov 32  }
  0xa0   : > { %347 = vadd.xlane.f32.xlu0 %v8648_v7  ;;  %v8668_v22 = vand.u32 4294901760, %v341_v18  ;;  %v8674_v26 = vsub.f32 %v384_v1, %v401_v3  ;;  %v425_v28 = vand.u32 4294901760, %v392_v23  ;;  %v428_v29 = vand.u32 4294901760, %v393_v24  ;;  %v342_v32 = vld [vmem:[%s297_s14 + $0x8] sm:$0xff]  ;;  %v396_v34 = vld [vmem:[#allocation7 + $0x60] sm:$0xff]  ;;  %v398_v39 = vld [vmem:[#allocation7 + $0x70] sm:$0xff] }
  0xa1   : > { %7366 = vmatprep.subr.bf16.mxu0 %v8650_v12  ;;  %v8664_v19 = vpack.c.bf16 %v416_v14, %v413_v13  ;;  %v8677_v27 = vpack.c.bf16 %v422_v21, %v419_v20  ;;  %v395_v33 = vld [vmem:[#allocation7 + $0x58] sm:$0xff]  ;;  %v431_v37 = vand.u32 4294901760, %v394_v30  ;;  %v397_v38 = vld [vmem:[#allocation7 + $0x68] sm:$0xff]  ;;  %v8690_v42 = vand.u32 4294901760, %v342_v32  ;;  %s338_s20 = scalar_lea.vmem [#allocation10], %s8623_s10  ;;  %s6200_s17 = sshll.u32 %s8420_s25, 8 }
  0xa2   : > { %7368 = vmatpush3.bf16.msra.mxu0 %v8650_v12  ;;  %v8671_v25 = vsub.f32 %v341_v18, %v8668_v22  ;;  %v399_v40 = vld [vmem:[#allocation7 + $0x78] sm:$0xff]  ;;  %v504_v41 = vand.u32 4294901760, %v8674_v26  ;;  %v8692_v43 = vsub.f32 %v386_v5, %v407_v8  ;;  %v8695_v44 = vpack.c.bf16 %v428_v29, %v425_v28  ;;  %s6059_s16 = sshll.u32 %s338_s20, 4  ;;  %s9429_s18 = scalar_lea.hbm %s9479_s6, %s6200_s17  ;;  %s9422_s16 = int_to_ptr.vmem [resolvable:$true] %s6059_s16 }
  0xa3   : > { %7370 = vmatprep.subr.bf16.mxu0 %v8652_v15  ;;  %v434_v45 = vand.u32 4294901760, %v395_v33  ;;  %v437_v48 = vand.u32 4294901760, %v396_v34  ;;  %v440_v49 = vand.u32 4294901760, %v397_v38  ;;  %v443_v50 = vand.u32 4294901760, %v398_v39  ;;  %s6046_s25 = scalar_lea.sflag [#allocation4], %s8620_s26  ;;  %s8272_s12 = scalar_lea.vmem %s9422_s16, 256 }
  0xa4   : > { %v8680_v31 = vand.u32 4294901760, %v8671_v25  ;;  %v446_v51 = vand.u32 4294901760, %v399_v40  ;;  %v511_v52 = vand.u32 4294901760, %v8686_v36  ;;  %v505_v53 = vsub.f32 %v8674_v26, %v504_v41  ;;  %p8273_p1 = scmp.ne.s32.totalorder %s9422_s16, %s8272_s12  ;;  %p9528_p13 = scmp.ne.s32.totalorder %s9507_s9, 0 }
  0xa5   : > { %v8705_v54 = vsub.f32 %v342_v32, %v8690_v42  ;;  %v518_v55 = vand.u32 4294901760, %v8692_v43  ;;  %v8708_v56 = vsub.f32 %v388_v10, %v413_v13  ;;  %v8711_v57 = vpack.c.bf16 %v434_v45, %v431_v37  ;;  %s8361_s29 = smov [#allocation10]  }
  0xa6   : > { %7372 = vmatpush3.bf16.msra.mxu0 %v8652_v15  ;;  %v484_v35 = vsub.f32 %v8671_v25, %v8680_v31  ;;  %v525_v58 = vand.u32 4294901760, %v8697_v47  ;;  %v8714_v59 = vsub.f32 %v389_v11, %v416_v14  ;;  %v8716_v60 = vpack.c.bf16 %v440_v49, %v437_v48  ;;  %p8274_p6 = pnand %p8273_p1, %p9528_p13  ;;  %s8276_s19 = sshll.u32 %s8361_s29, 4  ;;  %s8277_s19 = int_to_ptr.vmem [resolvable:$false] %s8276_s19 }
  0xa7   : > { %7374 = vmatprep.subr.bf16.mxu0 %v8664_v19  ;;  %v8718_v61 = vpack.c.bf16 %v446_v51, %v443_v50  ;;  %v512_v62 = vsub.f32 %v8686_v36, %v511_v52  ;;  %v506_v63 = vand.u32 4294901760, %v505_v53  ;;  %v8723_v1 = vand.u32 4294901760, %v8705_v54  ;;  %s8278_s14 = scalar_lea.vmem %s8277_s19, 512  ;;  %p8279_p4 = scmp.lt.s32.totalorder %s9422_s16, %s8277_s19 }
  0xa8   : > { %v485_v46 = vand.u32 4294901760, %v484_v35  ;;  %v519_v2 = vsub.f32 %v8692_v43, %v518_v55  ;;  %v532_v3 = vand.u32 4294901760, %v8708_v56  ;;  %v526_v4 = vsub.f32 %v8697_v47, %v525_v58  ;;  %p8275_p10 = pneg %p8274_p6  ;;  %p8280_p5 = scmp.lt.s32.totalorder %s8278_s14, %s8272_s12 }
  0xa9   : > { %v539_v5 = vand.u32 4294901760, %v8714_v59  ;;  %v8731_v6 = vsub.f32 %v8654_v16, %v419_v20  ;;  %v8734_v8 = vsub.f32 %v8656_v17, %v422_v21  ;;  %v8736_v9 = vsub.f32 %v392_v23, %v425_v28 }
  0xaa   : > { %7376 = vmatpush3.bf16.msra.mxu0 %v8664_v19  ;;  %6641 = vmatprep.mubr.f32.mxu0 %v485_v46  ;;  %v8738_v10 = vsub.f32 %v393_v24, %v428_v29  ;;  %v8740_v11 = vsub.f32 %v394_v30, %v431_v37  ;;  %v8742_v13 = vsub.f32 %v395_v33, %v434_v45  ;;  %v513_v16 = vand.u32 4294901760, %v512_v62  ;;  %p8281_p3 = por %p8280_p5, %p8279_p4 }
  0xab   : > { %7378 = vmatprep.subr.bf16.mxu0 %v8677_v27  ;;  %6851 = vmatprep.mubr.f32.mxu1 %v485_v46  ;;  %v8744_v14 = vsub.f32 %v396_v34, %v437_v48  ;;  %v8746_v18 = vsub.f32 %v397_v38, %v440_v49  ;;  %v8748_v32 = vsub.f32 %v398_v39, %v443_v50  ;;  %v520_v20 = vand.u32 4294901760, %v519_v2 }
  0xac   : > { %v8750_v35 = vsub.f32 %v399_v40, %v446_v51  ;;  %v494_v17 = vsub.f32 %v8705_v54, %v8723_v1  ;;  %v533_v21 = vsub.f32 %v8708_v56, %v532_v3  ;;  %v527_v23 = vand.u32 4294901760, %v526_v4  ;;  %p8282_p7 = pnand %p8281_p3, %p8275_p10 }
  0xad   : > { %v540_v24 = vsub.f32 %v8714_v59, %v539_v5  ;;  %v546_v28 = vand.u32 4294901760, %v8731_v6  ;;  %v553_v29 = vand.u32 4294901760, %v8734_v8  ;;  %v560_v30 = vand.u32 4294901760, %v8736_v9 }
  0xae   : > { %7380 = vmatpush3.bf16.msra.mxu0 %v8677_v27  ;;  %v567_v33 = vand.u32 4294901760, %v8738_v10  ;;  %v574_v34 = vand.u32 4294901760, %v8740_v11  ;;  %v581_v37 = vand.u32 4294901760, %v8742_v13  ;;  %v588_v38 = vand.u32 4294901760, %v8744_v14 }
  0xaf   : > { %7382 = vmatprep.subr.bf16.mxu0 %v8695_v44  ;;  %v595_v39 = vand.u32 4294901760, %v8746_v18  ;;  %v602_v40 = vand.u32 4294901760, %v8748_v32  ;;  %v609_v45 = vand.u32 4294901760, %v8750_v35  ;;  %v8771_v46 = vpack.c.bf16 %v511_v52, %v504_v41 }
  0xb0   : > { %v8773_v48 = vpack.c.bf16 %v525_v58, %v518_v55  ;;  %v8775_v49 = vpack.c.bf16 %v539_v5, %v532_v3  ;;  %v8777_v50 = vpack.c.bf16 %v553_v29, %v546_v28  ;;  %v7397_v51 = vpack.c.bf16 %v513_v16, %v506_v63 }
  0xb1   : > { %v8780_v53 = vpack.c.bf16 %v567_v33, %v560_v30  ;;  %v8782_v62 = vpack.c.bf16 %v581_v37, %v574_v34  ;;  %v8784_v2 = vpack.c.bf16 %v595_v39, %v588_v38  ;;  %v8786_v4 = vpack.c.bf16 %v609_v45, %v602_v40 }
  0xb2   : > { %7384 = vmatpush3.bf16.msra.mxu0 %v8695_v44  ;;  %v8788_v7 = vand.u32 4294901760, %v494_v17  ;;  %v534_v41 = vand.u32 4294901760, %v533_v21  ;;  %v541_v52 = vand.u32 4294901760, %v540_v24  ;;  %v7401_v55 = vpack.c.bf16 %v527_v23, %v520_v20 }
  0xb3   : > { %7386 = vmatprep.subr.bf16.mxu0 %v8711_v57  ;;  %v547_v58 = vsub.f32 %v8731_v6, %v546_v28  ;;  %v554_v63 = vsub.f32 %v8734_v8, %v553_v29  ;;  %v561_v17 = vsub.f32 %v8736_v9, %v560_v30  ;;  %v568_v21 = vsub.f32 %v8738_v10, %v567_v33 }
  0xb4   : > { %v7405_v3 = vpack.c.bf16 %v541_v52, %v534_v41  ;;  %v575_v20 = vsub.f32 %v8740_v11, %v574_v34  ;;  %v582_v29 = vsub.f32 %v8742_v13, %v581_v37  ;;  %v596_v30 = vsub.f32 %v8746_v18, %v595_v39 }
  0xb5   : > { %v548_v5 = vand.u32 4294901760, %v547_v58  ;;  %v555_v16 = vand.u32 4294901760, %v554_v63  ;;  %v562_v24 = vand.u32 4294901760, %v561_v17  ;;  %v569_v28 = vand.u32 4294901760, %v568_v21 }
  0xb6   : > { %7388 = vmatpush3.bf16.msra.mxu0 %v8711_v57  ;;  %v576_v52 = vand.u32 4294901760, %v575_v20  ;;  %v583_v58 = vand.u32 4294901760, %v582_v29  ;;  %v597_v34 = vand.u32 4294901760, %v596_v30  ;;  %v603_v63 = vsub.f32 %v8748_v32, %v602_v40  ;;  %v6191_v20 = vld [vmem:[%s9475_s2] ss:$0 sm:$0xff] }
  0xb7   : > { %7390 = vmatprep.subr.bf16.mxu0 %v8716_v60  ;;  %v7409_v23 = vpack.c.bf16 %v555_v16, %v548_v5  ;;  %v7413_v41 = vpack.c.bf16 %v569_v28, %v562_v24  ;;  %v610_v5 = vsub.f32 %v8750_v35, %v609_v45  ;;  %v7429_v39 = vpack.c.bf16 %v8686_v36, %v8674_v26  ;;  %v8930_v24 = vld [vmem:[#allocation8 + $0x30] sm:$0xff]  ;;  %v8932_v28 = vld [vmem:[#allocation8 + $0x38] sm:$0xff]  ;;  %v8934_v29 = vld [vmem:[#allocation8 + $0x40] sm:$0xff] }
  0xb8   : > { %v7433_v40 = vpack.c.bf16 %v8697_v47, %v8692_v43  ;;  %v7437_v45 = vpack.c.bf16 %v8714_v59, %v8708_v56  ;;  %v7441_v17 = vpack.c.bf16 %v8734_v8, %v8731_v6  ;;  %v7445_v26 = vpack.c.bf16 %v8738_v10, %v8736_v9 }
  0xb9   : > { %v7449_v36 = vpack.c.bf16 %v8742_v13, %v8740_v11  ;;  %v7453_v43 = vpack.c.bf16 %v8746_v18, %v8744_v14  ;;  %v7457_v47 = vpack.c.bf16 %v8750_v35, %v8748_v32  ;;  %v9518_v11 = vld [vmem:[#allocation16_spill] sm:$0xff]  ;;  %v8900_v35 = vld [vmem:[#allocation8 + $0x10] sm:$0xff]  ;;  %v1125_v30 = vand.u32 4294901760, %v8934_v29 }
  0xba   : > { %7392 = vmatpush3.bf16.msra.mxu0 %v8716_v60  ;;  %vm6037_vm4 = vcmask 523264   ;;  %vm6040_vm5 = vcmask 785408  }
  0xbb   : > { %7394 = vmatprep.subr.bf16.mxu0 %v8718_v61 }
  0xbe   : > { %7396 = vmatpush3.bf16.msra.mxu0 %v8718_v61 }
  0xbf   : > { %7398 = vmatprep.subr.bf16.mxu0 %v7397_v51 }
  0xc1   : > { %6642 = vmatmul.mubr.f32.vlgmr.msra.gmra.mrb[0].mxu0 %v8788_v7 }
  0xc2   : > { %7400 = vmatpush3.bf16.msra.mxu0 %v7397_v51  ;;  %6676 = vmatprep.mubr.f32.mxu0 %v8668_v22  ;;  %v589_v51 = vsub.f32 %v8744_v14, %v588_v38  ;;  %v611_v38 = vand.u32 4294901760, %v610_v5 }
  0xc3   : > { %7402 = vmatprep.subr.bf16.mxu0 %v7401_v55 }
  0xc4   : > { %v590_v33 = vand.u32 4294901760, %v589_v51 }
  0xc6   : > { %7404 = vmatpush3.bf16.msra.mxu0 %v7401_v55  ;;  %v7417_v55 = vpack.c.bf16 %v583_v58, %v576_v52  ;;  %v7421_v37 = vpack.c.bf16 %v597_v34, %v590_v33  ;;  %v1122_v52 = vand.u32 4294901760, %v8932_v28  ;;  %v8939_v58 = vld [vmem:[#allocation8 + $0x48] sm:$0xff]  ;;  %v6192_v33 = vld [vmem:[%s9476_s3] ss:$0 sm:$0xff] }
  0xc7   : > { %7406 = vmatprep.subr.bf16.mxu0 %v7405_v3 }
  0xca   : > { %7408 = vmatpush3.bf16.msra.mxu0 %v7405_v3  ;;  %v604_v3 = vand.u32 4294901760, %v603_v63 }
  0xcb   : > { %7410 = vmatprep.subr.bf16.mxu0 %v7409_v23 }
  0xcc   : > { %v7425_v16 = vpack.c.bf16 %v611_v38, %v604_v3 }
  0xce   : > { %7412 = vmatpush3.bf16.msra.mxu0 %v7409_v23 }
  0xcf   : > { %7414 = vmatprep.subr.bf16.mxu0 %v7413_v41 }
  0xd2   : > { %7416 = vmatpush3.bf16.msra.mxu0 %v7413_v41  ;;  %v1119_v41 = vand.u32 4294901760, %v8930_v24 }
  0xd3   : > { %7418 = vmatprep.subr.bf16.mxu0 %v7417_v55 }
  0xd4   : > { %v8951_v63 = vpack.c.bf16 %v1122_v52, %v1119_v41 }
  0xd6   : > { %7420 = vmatpush3.bf16.msra.mxu0 %v7417_v55  ;;  %v1128_v55 = vand.u32 4294901760, %v8939_v58 }
  0xd7   : > { %7422 = vmatprep.subr.bf16.mxu0 %v7421_v37 }
  0xda   : > { %7424 = vmatpush3.bf16.msra.mxu0 %v7421_v37  ;;  %v8957_v37 = vpack.c.bf16 %v1128_v55, %v1125_v30 }
  0xdb   : > { %7426 = vmatprep.subr.bf16.mxu0 %v7425_v16 }
  0xde   : > { %7428 = vmatpush3.bf16.msra.mxu0 %v7425_v16 }
  0xdf   : > { %7430 = vmatprep.subr.bf16.mxu0 %v7429_v39 }
  0xe1   : > { %6677 = vmatmul.mubr.f32.vlgmr.msra.gmra.mrb[0].mxu0 %v8690_v42 }
  0xe2   : > { %7432 = vmatpush3.bf16.msra.mxu0 %v7429_v39  ;;  %6711 = vmatprep.mubr.f32.mxu0 %v8671_v25 }
  0xe3   : > { %7434 = vmatprep.subr.bf16.mxu0 %v7433_v40 }
  0xe6   : > { %7436 = vmatpush3.bf16.msra.mxu0 %v7433_v40  ;;  %v8965_v40 = vld [vmem:[#allocation8 + $0x50] sm:$0xff] }
  0xe7   : > { %7438 = vmatprep.subr.bf16.mxu0 %v7437_v45 }
  0xea   : > { %7440 = vmatpush3.bf16.msra.mxu0 %v7437_v45  ;;  %v8967_v45 = vld [vmem:[#allocation8 + $0x58] sm:$0xff] }
  0xeb   : > { %7442 = vmatprep.subr.bf16.mxu0 %v7441_v17 }
  0xee   : > { %7444 = vmatpush3.bf16.msra.mxu0 %v7441_v17  ;;  %v8969_v17 = vld [vmem:[#allocation8 + $0x60] sm:$0xff] }
  0xef   : > { %7446 = vmatprep.subr.bf16.mxu0 %v7445_v26 }
  0xf2   : > { %7448 = vmatpush3.bf16.msra.mxu0 %v7445_v26 }
  0xf3   : > { %7450 = vmatprep.subr.bf16.mxu0 %v7449_v36 }
  0xf6   : > { %7452 = vmatpush3.bf16.msra.mxu0 %v7449_v36 }
  0xf7   : > { %7454 = vmatprep.subr.bf16.mxu0 %v7453_v43 }
  0xfa   : > { %7456 = vmatpush3.bf16.msra.mxu0 %v7453_v43  ;;  %v1131_v43 = vand.u32 4294901760, %v8965_v40 }
  0xfb   : > { %7458 = vmatprep.subr.bf16.mxu0 %v7457_v47 }
  0xfe   : > { %7460 = vmatpush3.bf16.msra.mxu0 %v7457_v47  ;;  %v1134_v47 = vand.u32 4294901760, %v8967_v45 }
  0xff   : > { %7462 = vmatprep.subr.bf16.mxu0 %v8650_v12 }
 0x101   : > { %6712 = vmatmul.mubr.f32.vlgmr.msra.gmra.mrb[0].mxu0 %v8705_v54 }
 0x102   : > { %7464 = vmatpush3.bf16.msra.mxu0 %v8650_v12  ;;  %6746 = vmatprep.mubr.f32.mxu0 %v8680_v31 }
 0x103   : > { %7466 = vmatprep.subr.bf16.mxu0 %v8652_v15 }
 0x106   : > { %7468 = vmatpush3.bf16.msra.mxu0 %v8652_v15 }
 0x107   : > { %7470 = vmatprep.subr.bf16.mxu0 %v8664_v19 }
 0x10a   : > { %7472 = vmatpush3.bf16.msra.mxu0 %v8664_v19 }
 0x10b   : > { %7474 = vmatprep.subr.bf16.mxu0 %v8677_v27 }
 0x10e   : > { %7476 = vmatpush3.bf16.msra.mxu0 %v8677_v27 }
 0x10f   : > { %7478 = vmatprep.subr.bf16.mxu0 %v8695_v44 }
 0x112   : > { %7480 = vmatpush3.bf16.msra.mxu0 %v8695_v44 }
 0x113   : > { %7482 = vmatprep.subr.bf16.mxu0 %v8711_v57 }
 0x116   : > { %7484 = vmatpush3.bf16.msra.mxu0 %v8711_v57 }
 0x117   : > { %7486 = vmatprep.subr.bf16.mxu0 %v8716_v60 }
 0x11a   : > { %7488 = vmatpush3.bf16.msra.mxu0 %v8716_v60 }
 0x11b   : > { %7490 = vmatprep.subr.bf16.mxu0 %v8718_v61 }
 0x11e   : > { %7492 = vmatpush3.bf16.msra.mxu0 %v8718_v61 }
 0x11f   : > { %7494 = vmatprep.subr.bf16.mxu0 %v8771_v46 }
 0x121   : > { %6747 = vmatmul.mubr.f32.vlgmr.msra.gmra.mrb[0].mxu0 %v8723_v1 }
 0x122   : > { %7496 = vmatpush3.bf16.msra.mxu0 %v8771_v46  ;;  %6781 = vmatprep.mubr.f32.mxu0 %v8668_v22  ;;  %v8902_v46 = vld [vmem:[#allocation8 + $0x18] sm:$0xff] }
 0x123   : > { %7498 = vmatprep.subr.bf16.mxu0 %v8773_v48 }
 0x126   : > { %7500 = vmatpush3.bf16.msra.mxu0 %v8773_v48  ;;  %v8904_v48 = vld [vmem:[#allocation8 + $0x20] sm:$0xff] }
 0x127   : > { %7502 = vmatprep.subr.bf16.mxu0 %v8775_v49 }
 0x129   : > { %v346_v56 = vpop.xlane.xlu0 %345 }
 0x12a   : > { %7504 = vmatpush3.bf16.msra.mxu0 %v8775_v49  ;;  %v350_v59 = vmul.f32 0.0078125, %v346_v56  ;;  %v1107_v49 = vand.u32 4294901760, %v8900_v35  ;;  %v8977_v56 = vld [vmem:[#allocation8 + $0x68] sm:$0xff] }
 0x12b   : > { %7506 = vmatprep.subr.bf16.mxu0 %v8777_v50 }
 0x12c   : > { %v8849_v6 = vsub.f32 %v8645_v0, %v350_v59 }
 0x12d   : > { %v348_v8 = vpop.xlane.xlu0 %347 }
 0x12e   : > { %7508 = vmatpush3.bf16.msra.mxu0 %v8777_v50  ;;  %v351_v9 = vmul.f32 0.0078125, %v348_v8  ;;  %v354_v10 = vmul.f32 %v8849_v6, %v8849_v6  ;;  %v1110_v50 = vand.u32 4294901760, %v8902_v46  ;;  %v1140_v8 = vand.u32 4294901760, %v8977_v56 }
 0x12f   : > { %7510 = vmatprep.subr.bf16.mxu0 %v8780_v53 }
 0x130   : > { %v8856_v13 = vsub.f32 %v9518_v11, %v351_v9  ;;  %356 = vadd.xlane.f32.xlu1 %v354_v10  ;;  %v8984_v9 = vpack.c.bf16 %v1134_v47, %v1131_v43 }
 0x132   : > { %7512 = vmatpush3.bf16.msra.mxu0 %v8780_v53  ;;  %v355_v0 = vmul.f32 %v8856_v13, %v8856_v13  ;;  %v8908_v53 = vld [vmem:[#allocation8 + $0x28] sm:$0xff] }
 0x133   : > { %7514 = vmatprep.subr.bf16.mxu0 %v8782_v62 }
 0x134   : > { %358 = vadd.xlane.f32.xlu1 %v355_v0 }
 0x136   : > { %7516 = vmatpush3.bf16.msra.mxu0 %v8782_v62  ;;  %v1113_v62 = vand.u32 4294901760, %v8904_v48 }
 0x137   : > { %7518 = vmatprep.subr.bf16.mxu0 %v8784_v2 }
 0x13a   : > { %7520 = vmatpush3.bf16.msra.mxu0 %v8784_v2  ;;  %v1116_v2 = vand.u32 4294901760, %v8908_v53 }
 0x13b   : > { %7522 = vmatprep.subr.bf16.mxu0 %v8786_v4 }
 0x13c   : > { %v8922_v21 = vpack.c.bf16 %v1116_v2, %v1113_v62 }
 0x13e   : > { %7524 = vmatpush3.bf16.msra.mxu0 %v8786_v4  ;;  %v8916_v4 = vpack.c.bf16 %v1110_v50, %v1107_v49 }
 0x13f   : > { %7526 = vmatprep.subr.bf16.mxu0 %v8650_v12 }
 0x141   : > { %6782 = vmatmul.mubr.f32.vlgmr.msra.gmra.mrb[0].mxu0 %v8690_v42 }
 0x142   : > { %7528 = vmatpush3.bf16.msra.mxu0 %v8650_v12  ;;  %6816 = vmatprep.mubr.f32.mxu0 %v8668_v22  ;;  %v8886_v12 = vld [vmem:[#allocation8] sm:$0xff] }
 0x143   : > { %7530 = vmatprep.subr.bf16.mxu0 %v8652_v15 }
 0x146   : > { %7532 = vmatpush3.bf16.msra.mxu0 %v8652_v15  ;;  %v8888_v15 = vld [vmem:[#allocation8 + $0x8] sm:$0xff] }
 0x147   : > { %7534 = vmatprep.subr.bf16.mxu0 %v8664_v19 }
 0x14a   : > { %7536 = vmatpush3.bf16.msra.mxu0 %v8664_v19  ;;  %v1101_v19 = vand.u32 4294901760, %v8886_v12 }
 0x14b   : > { %7538 = vmatprep.subr.bf16.mxu0 %v8677_v27 }
 0x14c   : > { %v9002_v0 = vsub.f32 %v8886_v12, %v1101_v19 }
 0x14e   : > { %7540 = vmatpush3.bf16.msra.mxu0 %v8677_v27  ;;  %v1104_v27 = vand.u32 4294901760, %v8888_v15  ;;  %v9492_v12 = vand.u32 4294901760, %v9002_v0 }
 0x14f   : > { %7542 = vmatprep.subr.bf16.mxu0 %v8695_v44 }
 0x152   : > { %7544 = vmatpush3.bf16.msra.mxu0 %v8695_v44 }
 0x153   : > { %7546 = vmatprep.subr.bf16.mxu0 %v8711_v57 }
 0x156   : > { %7548 = vmatpush3.bf16.msra.mxu0 %v8711_v57 }
 0x157   : > { %7550 = vmatprep.subr.bf16.mxu0 %v8716_v60 }
 0x15a   : > { %7552 = vmatpush3.bf16.msra.mxu0 %v8716_v60  ;;  %v8896_v60 = vpack.c.bf16 %v1104_v27, %v1101_v19 }
 0x15b   : > { %7554 = vmatprep.subr.bf16.mxu0 %v8718_v61 }
 0x15c   : > { %7558 = vmatprep.subr.bf16.mxu1 %v8896_v60 }
 0x15d   : > { %7560 = vmatpush3.bf16.msra.mxu1 %v8896_v60 }
 0x15e   : > { %7556 = vmatpush3.bf16.msra.mxu0 %v8718_v61  ;;  %7562 = vmatprep.subr.bf16.mxu1 %v8916_v4 }
 0x161   : > { %6817 = vmatmul.mubr.f32.vlgmr.msra.gmra.mrb[0].mxu0 %v8690_v42  ;;  %7564 = vmatpush3.bf16.msra.mxu1 %v8916_v4 }
 0x162   : > { %7566 = vmatprep.subr.bf16.mxu1 %v8922_v21 }
 0x165   : > { %7568 = vmatpush3.bf16.msra.mxu1 %v8922_v21 }
 0x166   : > { %7570 = vmatprep.subr.bf16.mxu1 %v8951_v63 }
 0x169   : > { %7572 = vmatpush3.bf16.msra.mxu1 %v8951_v63 }
 0x16a   : > { %7574 = vmatprep.subr.bf16.mxu1 %v8957_v37 }
 0x16d   : > { %7576 = vmatpush3.bf16.msra.mxu1 %v8957_v37 }
 0x16e   : > { %7578 = vmatprep.subr.bf16.mxu1 %v8984_v9 }
 0x171   : > { %7580 = vmatpush3.bf16.msra.mxu1 %v8984_v9 }
 0x1bd   : > { %v357_v44 = vpop.xlane.xlu1 %356 }
 0x1be   : > { %v360_v57 = vmul.f32 0.0078125, %v357_v44  ;;  %v9007_v44 = vsub.f32 %v8888_v15, %v1104_v27  ;;  %v1205_v27 = vsub.f32 %v9002_v0, %v9492_v12 }
 0x1c0   : > { %v362_v14 = vadd.f32 1e-05, %v360_v57  ;;  %v9491_v19 = vand.u32 4294901760, %v9007_v44 }
 0x1c1   : > { %v359_v61 = vpop.xlane.xlu1 %358 }
 0x1c2   : > { %8120 = vrsqrt.f32 %v362_v14  ;;  %v361_v18 = vmul.f32 0.0078125, %v359_v61  ;;  %v9012_v14 = vld [vmem:[#allocation8 + $0x70] sm:$0xff]  ;;  %v9014_v61 = vld [vmem:[#allocation8 + $0x78] sm:$0xff] }
 0x1c4   : > { %v363_v32 = vadd.f32 1e-05, %v361_v18  ;;  %v1143_v18 = vand.u32 4294901760, %v9012_v14 }
 0x1c6   : > { %8122 = vrsqrt.f32 %v363_v32  ;;  %v1146_v32 = vand.u32 4294901760, %v9014_v61 }
 0x1c8   : > { %v9025_v15 = vpack.c.bf16 %v1146_v32, %v1143_v18 }
 0x1cc   : > { %v8121_v23 = vpop.eup %8120 }
 0x1cd   : > { %v366_v51 = vmul.f32 %v8121_v23, %v8849_v6  ;;  %v1137_v6 = vand.u32 4294901760, %v8969_v17  ;;  %v1212_v23 = vsub.f32 %v9007_v44, %v9491_v19 }
 0x1cf   : > { %v374_v34 = vmul.f32 %v6191_v20, %v366_v51  ;;  %v8993_v11 = vpack.c.bf16 %v1140_v8, %v1137_v6  ;;  %v9036_v51 = vsub.f32 %v8900_v35, %v1107_v49  ;;  %v9058_v49 = vsub.f32 %v8908_v53, %v1116_v2 }
 0x1d0   : > { %v8123_v5 = vpop.eup %8122  ;;  %v9072_v2 = vsub.f32 %v8930_v24, %v1119_v41  ;;  %v9089_v24 = vsub.f32 %v8939_v58, %v1128_v55  ;;  %v9095_v41 = vsub.f32 %v8967_v45, %v1134_v47 }
 0x1d1   : > { %v382_v3 = vadd.f32 %v6192_v33, %v374_v34  ;;  %v367_v38 = vmul.f32 %v8123_v5, %v8856_v13  ;;  %7582 = vmatprep.subr.bf16.mxu1 %v8993_v11  ;;  %v1206_v34 = vand.u32 4294901760, %v1205_v27  ;;  %v1213_v5 = vand.u32 4294901760, %v1212_v23 }
 0x1d2   : > { %7584 = vmatpush3.bf16.msra.mxu1 %v8993_v11 }
 0x1d3   : > { %v8962_v16 = vmul.f32 0.17677669, %v382_v3  ;;  %v375_v39 = vmul.f32 %v6191_v20, %v367_v38  ;;  %7586 = vmatprep.subr.bf16.mxu1 %v9025_v15  ;;  %v9490_v3 = vand.u32 4294901760, %v9036_v51 }
 0x1d5   : > { %9519 = vst [vmem:[#allocation16_spill] sm:$0xff] %v8962_v16  ;;  %v8971_v26 = vadd.f32 %v6192_v33, %v375_v39  ;;  %v1795_v36 = vsel %vm1793_vm0, %v8962_v16, 0  ;;  %v9041_v33 = vsub.f32 %v8902_v46, %v1110_v50  ;;  %v7589_v39 = vpack.c.bf16 %v1213_v5, %v1206_v34 }
 0x1d6   : > { %v8979_v59 = vand.u32 4294901760, %v1795_v36  ;;  %7588 = vmatpush3.bf16.msra.mxu1 %v9025_v15  ;;  %v1219_v35 = vsub.f32 %v9036_v51, %v9490_v3  ;;  %v9053_v46 = vsub.f32 %v8904_v48, %v1113_v62  ;;  %v1246_v5 = vand.u32 4294901760, %v9072_v2 }
 0x1d7   : > { %v9489_v38 = vand.u32 4294901760, %v9041_v33  ;;  %7590 = vmatprep.subr.bf16.mxu1 %v7589_v39 }
 0x1d8   : > { %v8987_v10 = vsub.f32 %v1795_v36, %v8979_v59  ;;  %v1220_v36 = vand.u32 4294901760, %v1219_v35  ;;  %v9084_v35 = vsub.f32 %v8934_v29, %v1125_v30  ;;  %v9102_v29 = vsub.f32 %v8969_v17, %v1137_v6 }
 0x1d9   : > { %v1226_v50 = vsub.f32 %v9041_v33, %v9489_v38  ;;  %6852 = vmatmul.mubr.f32.vlgmr.msra.gmra.mrb[0].mxu1 %v8788_v7  ;;  %v9077_v7 = vsub.f32 %v8932_v28, %v1122_v52  ;;  %v9092_v28 = vsub.f32 %v8965_v40, %v1131_v43  ;;  %v1267_v30 = vand.u32 4294901760, %v9089_v24 }
 0x1da   : > { %9520 = vst [vmem:[#allocation17_spill] sm:$0xff] %v8987_v10  ;;  %v9488_v13 = vand.u32 4294901760, %v8987_v10  ;;  %7592 = vmatpush3.bf16.msra.mxu1 %v7589_v39  ;;  %6886 = vmatprep.mubr.f32.mxu1 %v8668_v22  ;;  %v1260_v58 = vand.u32 4294901760, %v9084_v35  ;;  %v1281_v40 = vand.u32 4294901760, %v9095_v41  ;;  %v1288_v47 = vand.u32 4294901760, %v9102_v29 }
 0x1db   : > { %v1227_v48 = vand.u32 4294901760, %v1226_v50  ;;  %v1253_v39 = vand.u32 4294901760, %v9077_v7  ;;  %v1247_v50 = vsub.f32 %v9072_v2, %v1246_v5  ;;  %v1274_v55 = vand.u32 4294901760, %v9092_v28 }
 0x1dc   : > { %v1876_v57 = vsub.f32 %v8987_v10, %v9488_v13  ;;  %v1261_v17 = vsub.f32 %v9084_v35, %v1260_v58  ;;  %v1268_v6 = vsub.f32 %v9089_v24, %v1267_v30  ;;  %v9524_v10 = vand.u32 4294901760, %v9041_v33 }
 0x1dd   : > { %v7593_v27 = vpack.c.bf16 %v1227_v48, %v1220_v36  ;;  %v1254_v36 = vsub.f32 %v9077_v7, %v1253_v39  ;;  %v1248_v45 = vand.u32 4294901760, %v1247_v50  ;;  %v9112_v48 = vsub.f32 %v8977_v56, %v1140_v8 }
 0x1de   : > { %v1877_v20 = vand.u32 4294901760, %v1876_v57  ;;  %v1232_v57 = vand.u32 4294901760, %v9053_v46  ;;  %v1301_v50 = vsub.f32 %v9012_v14, %v1143_v18  ;;  %v1262_v56 = vand.u32 4294901760, %v1261_v17 }
 0x1df   : > { %7594 = vmatprep.subr.bf16.mxu1 %v7593_v27  ;;  %v1255_v43 = vand.u32 4294901760, %v1254_v36  ;;  %v1269_v8 = vand.u32 4294901760, %v1268_v6  ;;  %v9521_v17 = vand.u32 4294901760, %v9002_v0  ;;  %v9522_v6 = vand.u32 4294901760, %v9007_v44 }
 0x1e0   : > { %7033 = vmatprep.mubr.f32.mxu0 %v1877_v20  ;;  %v1239_v20 = vand.u32 4294901760, %v9058_v49  ;;  %v1233_v62 = vsub.f32 %v9053_v46, %v1232_v57  ;;  %7596 = vmatpush3.bf16.msra.mxu1 %v7593_v27  ;;  %v1302_v3 = vand.u32 4294901760, %v1301_v50 }
 0x1e1   : > { %v7601_v27 = vpack.c.bf16 %v1255_v43, %v1248_v45  ;;  %v7605_v45 = vpack.c.bf16 %v1269_v8, %v1262_v56 }
 0x1e2   : > { %v1240_v53 = vsub.f32 %v9058_v49, %v1239_v20  ;;  %v1234_v23 = vand.u32 4294901760, %v1233_v62  ;;  %v1275_v62 = vsub.f32 %v9092_v28, %v1274_v55  ;;  %v1303_v14 = vsub.f32 %v1301_v50, %v1302_v3 }
 0x1e4   : > { %v1241_v34 = vand.u32 4294901760, %v1240_v53  ;;  %v1282_v53 = vsub.f32 %v9095_v41, %v1281_v40  ;;  %v1276_v36 = vand.u32 4294901760, %v1275_v62  ;;  %v9131_v62 = vpack.c.bf16 %v9522_v6, %v9521_v17 }
 0x1e5   : > { %v1304_v8 = vand.u32 4294901760, %v1303_v14 }
 0x1e6   : > { %v7597_v52 = vpack.c.bf16 %v1241_v34, %v1234_v23  ;;  %v1289_v23 = vsub.f32 %v9102_v29, %v1288_v47  ;;  %v1295_v34 = vand.u32 4294901760, %v9112_v48  ;;  %v1283_v13 = vand.u32 4294901760, %v1282_v53 }
 0x1e7   : > { %v9523_v53 = vand.u32 4294901760, %v9036_v51 }
 0x1e8   : > { %7598 = vmatprep.subr.bf16.mxu1 %v7597_v52  ;;  %v1296_v38 = vsub.f32 %v9112_v48, %v1295_v34  ;;  %v7609_v19 = vpack.c.bf16 %v1283_v13, %v1276_v36  ;;  %v1290_v12 = vand.u32 4294901760, %v1289_v23  ;;  %v9143_v13 = vpack.c.bf16 %v1267_v30, %v1260_v58 }
 0x1e9   : > { %7600 = vmatpush3.bf16.msra.mxu1 %v7597_v52  ;;  %v1308_v52 = vsub.f32 %v9014_v61, %v1146_v32  ;;  %v9137_v61 = vpack.c.bf16 %v9524_v10, %v9523_v53  ;;  %v9139_v32 = vpack.c.bf16 %v1239_v20, %v1232_v57  ;;  %v9147_v23 = vpack.c.bf16 %v1295_v34, %v1288_v47 }
 0x1ea   : > { %7602 = vmatprep.subr.bf16.mxu1 %v7601_v27  ;;  %v1297_v16 = vand.u32 4294901760, %v1296_v38  ;;  %v9145_v38 = vpack.c.bf16 %v1281_v40, %v1274_v55  ;;  %v7621_v57 = vpack.c.bf16 %v9007_v44, %v9002_v0  ;;  %v7625_v20 = vpack.c.bf16 %v9041_v33, %v9036_v51 }
 0x1eb   : > { %v1309_v43 = vand.u32 4294901760, %v1308_v52  ;;  %v7637_v0 = vpack.c.bf16 %v9089_v24, %v9084_v35  ;;  %v7641_v44 = vpack.c.bf16 %v9095_v41, %v9092_v28  ;;  %v9173_v51 = vmul.f32 0.17677669, %v8971_v26 }
 0x1ec   : > { %v7613_v56 = vpack.c.bf16 %v1297_v16, %v1290_v12  ;;  %v7629_v16 = vpack.c.bf16 %v9058_v49, %v9053_v46  ;;  %v7633_v12 = vpack.c.bf16 %v9077_v7, %v9072_v2 }
 0x1ed   : > { %7604 = vmatpush3.bf16.msra.mxu1 %v7601_v27  ;;  %v1310_v18 = vsub.f32 %v1308_v52, %v1309_v43  ;;  %v9141_v27 = vpack.c.bf16 %v1253_v39, %v1246_v5  ;;  %v9149_v17 = vpack.c.bf16 %v1309_v43, %v1302_v3  ;;  %v1798_v33 = vsel %vm1793_vm0, %v9173_v51, 0 }
 0x1ee   : > { %7606 = vmatprep.subr.bf16.mxu1 %v7605_v45  ;;  %v9180_v3 = vand.u32 4294901760, %v1798_v33 }
 0x1ef   : > { %v1311_v36 = vand.u32 4294901760, %v1310_v18 }
 0x1f0   : > { %v1884_v46 = vsub.f32 %v1798_v33, %v9180_v3 }
 0x1f1   : > { %7608 = vmatpush3.bf16.msra.mxu1 %v7605_v45  ;;  %v7617_v10 = vpack.c.bf16 %v1311_v36, %v1304_v8 }
 0x1f2   : > { %7610 = vmatprep.subr.bf16.mxu1 %v7609_v19  ;;  %v1885_v24 = vand.u32 4294901760, %v1884_v46 }
 0x1f4   : > { %v1886_v30 = vsub.f32 %v1884_v46, %v1885_v24 }
 0x1f5   : > { %7612 = vmatpush3.bf16.msra.mxu1 %v7609_v19  ;;  %v7649_v19 = vpack.c.bf16 %v1308_v52, %v1301_v50  ;;  %v9525_v52 = vld [vmem:[#allocation17_spill] sm:$0xff] }
 0x1f6   : > { %7614 = vmatprep.subr.bf16.mxu1 %v7613_v56  ;;  %v1887_v34 = vand.u32 4294901760, %v1886_v30 }
 0x1f9   : > { %7616 = vmatpush3.bf16.msra.mxu1 %v7613_v56 }
 0x1fa   : > { %7618 = vmatprep.subr.bf16.mxu1 %v7617_v10 }
 0x1fd   : > { %7620 = vmatpush3.bf16.msra.mxu1 %v7617_v10 }
 0x1fe   : > { %7622 = vmatprep.subr.bf16.mxu1 %v7621_v57 }
 0x200   : > { %6887 = vmatmul.mubr.f32.vlgmr.msra.gmra.mrb[0].mxu1 %v8690_v42 }
 0x201   : > { %7624 = vmatpush3.bf16.msra.mxu1 %v7621_v57  ;;  %6921 = vmatprep.mubr.f32.mxu1 %v8671_v25  ;;  %v7645_v25 = vpack.c.bf16 %v9112_v48, %v9102_v29 }
 0x202   : > { %7626 = vmatprep.subr.bf16.mxu1 %v7625_v20 }
 0x205   : > { %7628 = vmatpush3.bf16.msra.mxu1 %v7625_v20 }
 0x206   : > { %7630 = vmatprep.subr.bf16.mxu1 %v7629_v16 }
 0x209   : > { %7632 = vmatpush3.bf16.msra.mxu1 %v7629_v16 }
 0x20a   : > { %7634 = vmatprep.subr.bf16.mxu1 %v7633_v12 }
 0x20d   : > { %7636 = vmatpush3.bf16.msra.mxu1 %v7633_v12 }
 0x20e   : > { %7638 = vmatprep.subr.bf16.mxu1 %v7637_v0 }
 0x211   : > { %7640 = vmatpush3.bf16.msra.mxu1 %v7637_v0 }
 0x212   : > { %7642 = vmatprep.subr.bf16.mxu1 %v7641_v44 }
 0x215   : > { %7644 = vmatpush3.bf16.msra.mxu1 %v7641_v44 }
 0x216   : > { %7646 = vmatprep.subr.bf16.mxu1 %v7645_v25 }
 0x219   : > { %7648 = vmatpush3.bf16.msra.mxu1 %v7645_v25 }
 0x21a   : > { %7650 = vmatprep.subr.bf16.mxu1 %v7649_v19 }
 0x21d   : > { %7652 = vmatpush3.bf16.msra.mxu1 %v7649_v19  ;;  %v9527_v19 = vld [vmem:[#allocation16_spill] sm:$0xff] }
 0x21e   : > { %7654 = vmatprep.subr.bf16.mxu1 %v8896_v60 }
 0x220   : > { %6922 = vmatmul.mubr.f32.vlgmr.msra.gmra.mrb[0].mxu1 %v8705_v54 }
 0x221   : > { %7656 = vmatpush3.bf16.msra.mxu1 %v8896_v60  ;;  %6956 = vmatprep.mubr.f32.mxu1 %v8680_v31 }
 0x222   : > { %7658 = vmatprep.subr.bf16.mxu1 %v8916_v4 }
 0x225   : > { %7660 = vmatpush3.bf16.msra.mxu1 %v8916_v4 }
 0x226   : > { %7662 = vmatprep.subr.bf16.mxu1 %v8922_v21 }
 0x229   : > { %7664 = vmatpush3.bf16.msra.mxu1 %v8922_v21 }
 0x22a   : > { %7666 = vmatprep.subr.bf16.mxu1 %v8951_v63 }
 0x22d   : > { %7668 = vmatpush3.bf16.msra.mxu1 %v8951_v63 }
 0x22e   : > { %7670 = vmatprep.subr.bf16.mxu1 %v8957_v37 }
 0x231   : > { %7672 = vmatpush3.bf16.msra.mxu1 %v8957_v37 }
 0x232   : > { %7674 = vmatprep.subr.bf16.mxu1 %v8984_v9 }
 0x234   : > { %v9183_v54 = vpop.f32.mrb[0].mxu0 }
 0x235   : > { %v1804_v31 = vsel %vm1793_vm0, %v9183_v54, 0  ;;  %v9188_v26 = vpop.f32.mrb[1].mxu0  ;;  %7676 = vmatpush3.bf16.msra.mxu1 %v8984_v9 }
 0x236   : > { %v1810_v49 = vand.u32 4294901760, %v1804_v31  ;;  %v1801_v2 = vsel %vm1793_vm0, %v9188_v26, 0  ;;  %7678 = vmatprep.subr.bf16.mxu1 %v8993_v11 }
 0x237   : > { %v1807_v7 = vand.u32 4294901760, %v1801_v2 }
 0x238   : > { %v1902_v5 = vsub.f32 %v1804_v31, %v1810_v49 }
 0x239   : > { %v7749_v39 = vpack.c.bf16 %v1810_v49, %v1807_v7  ;;  %v1895_v35 = vsub.f32 %v1801_v2, %v1807_v7  ;;  %7680 = vmatpush3.bf16.msra.mxu1 %v8993_v11 }
 0x23a   : > { %v1903_v28 = vand.u32 4294901760, %v1902_v5  ;;  %7682 = vmatprep.subr.bf16.mxu1 %v9025_v15 }
 0x23b   : > { %7750 = vmatprep.subr.bf16.mxu0 %v7749_v39  ;;  %v1896_v41 = vand.u32 4294901760, %v1895_v35  ;;  %v7757_v29 = vpack.c.bf16 %v1902_v5, %v1895_v35 }
 0x23c   : > { %7752 = vmatpush3.bf16.xpose.msra.mxu0 %v7749_v39  ;;  %v1904_v58 = vsub.f32 %v1902_v5, %v1903_v28 }
 0x23d   : > { %v1897_v55 = vsub.f32 %v1895_v35, %v1896_v41  ;;  %v7765_v40 = vpack.c.bf16 %v1903_v28, %v1896_v41  ;;  %7684 = vmatpush3.bf16.msra.mxu1 %v9025_v15 }
 0x23e   : > { %v1905_v47 = vand.u32 4294901760, %v1904_v58  ;;  %7686 = vmatprep.subr.bf16.mxu1 %v9131_v62 }
 0x23f   : > { %v1898_v48 = vand.u32 4294901760, %v1897_v55 }
 0x240   : > { %6957 = vmatmul.mubr.f32.vlgmr.msra.gmra.mrb[0].mxu1 %v8723_v1  ;;  %v9526_v1 = vand.u32 4294901760, %v9525_v52 }
 0x241   : > { %v7753_v50 = vpack.c.bf16 %v1905_v47, %v1898_v48  ;;  %7688 = vmatpush3.bf16.msra.mxu1 %v9131_v62  ;;  %6991 = vmatprep.mubr.f32.mxu1 %v8668_v22 }
 0x242   : > { %7690 = vmatprep.subr.bf16.mxu1 %v9137_v61 }
 0x243   : > { %7034 = vmatmul.mubr.f32.vlgmr.msra.gmra.mrb[2].mxu0 %v1887_v34  ;;  %7754 = vmatprep.subr.bf16.mxu0 %v7753_v50 }
 0x244   : > { %7756 = vmatpush3.bf16.xpose.msra.mxu0 %v7753_v50  ;;  %7040 = vmatprep.mubr.f32.mxu0 %v8979_v59 }
 0x245   : > { %7758 = vmatprep.subr.bf16.mxu0 %v7757_v29  ;;  %7692 = vmatpush3.bf16.msra.mxu1 %v9137_v61 }
 0x246   : > { %7694 = vmatprep.subr.bf16.mxu1 %v9139_v32 }
 0x249   : > { %7696 = vmatpush3.bf16.msra.mxu1 %v9139_v32 }
 0x24a   : > { %7698 = vmatprep.subr.bf16.mxu1 %v9141_v27 }
 0x24b   : > { %7041 = vmatmul.mubr.f32.vlgmr.msra.gmra.mrb[2].mxu0 %v9180_v3 }
 0x24c   : > { %7760 = vmatpush3.bf16.xpose.msra.mxu0 %v7757_v29  ;;  %7047 = vmatprep.mubr.f32.mxu0 %v9525_v52 }
 0x24d   : > { %7762 = vmatprep.subr.bf16.mxu0 %v7749_v39  ;;  %7700 = vmatpush3.bf16.msra.mxu1 %v9141_v27 }
 0x24e   : > { %7702 = vmatprep.subr.bf16.mxu1 %v9143_v13 }
 0x251   : > { %7704 = vmatpush3.bf16.msra.mxu1 %v9143_v13 }
 0x252   : > { %7706 = vmatprep.subr.bf16.mxu1 %v9145_v38 }
 0x253   : > { %7048 = vmatmul.mubr.f32.vlgmr.msra.gmra.mrb[2].mxu0 %v1884_v46 }
 0x254   : > { %7764 = vmatpush3.bf16.xpose.msra.mxu0 %v7749_v39  ;;  %7054 = vmatprep.mubr.f32.mxu0 %v9526_v1 }
 0x255   : > { %7766 = vmatprep.subr.bf16.mxu0 %v7765_v40  ;;  %7708 = vmatpush3.bf16.msra.mxu1 %v9145_v38 }
 0x256   : > { %7710 = vmatprep.subr.bf16.mxu1 %v9147_v23 }
 0x259   : > { %7712 = vmatpush3.bf16.msra.mxu1 %v9147_v23 }
 0x25a   : > { %7714 = vmatprep.subr.bf16.mxu1 %v9149_v17 }
 0x25b   : > { %7055 = vmatmul.mubr.f32.vlgmr.msra.gmra.mrb[2].mxu0 %v1885_v24 }
 0x25c   : > { %7768 = vmatpush3.bf16.xpose.msra.mxu0 %v7765_v40  ;;  %7061 = vmatprep.mubr.f32.mxu0 %v8979_v59 }
 0x25d   : > { %7770 = vmatprep.subr.bf16.mxu0 %v7749_v39  ;;  %7716 = vmatpush3.bf16.msra.mxu1 %v9149_v17 }
 0x25e   : > { %7718 = vmatprep.subr.bf16.mxu1 %v8896_v60 }
 0x260   : > { %6992 = vmatmul.mubr.f32.vlgmr.msra.gmra.mrb[0].mxu1 %v8690_v42 }
 0x261   : > { %7720 = vmatpush3.bf16.msra.mxu1 %v8896_v60  ;;  %7026 = vmatprep.mubr.f32.mxu1 %v8668_v22  ;;  %v1786_v22 = vlaneseq }
 0x262   : > { %7722 = vmatprep.subr.bf16.mxu1 %v8916_v4 }
 0x263   : > { %7062 = vmatmul.mubr.f32.vlgmr.msra.gmra.mrb[2].mxu0 %v9180_v3  ;;  %v9247_v60 = vshrl.u32 %v1786_v22, 7 }
 0x264   : > { %7772 = vmatpush3.bf16.xpose.msra.mxu0 %v7749_v39  ;;  %7068 = vmatprep.mubr.f32.mxu0 %v8979_v59 }
 0x265   : > { %7724 = vmatpush3.bf16.msra.mxu1 %v8916_v4  ;;  %v9250_v4 = vadd.s32 8, %v9247_v60 }
 0x266   : > { %7726 = vmatprep.subr.bf16.mxu1 %v8922_v21 }
 0x269   : > { %7728 = vmatpush3.bf16.msra.mxu1 %v8922_v21  ;;  %v9252_v21 = vand.u32 127, %v1786_v22 }
 0x26a   : > { %7730 = vmatprep.subr.bf16.mxu1 %v8951_v63 }
 0x26b   : > { %7069 = vmatmul.mubr.f32.vlgmr.msra.gmra.mrb[2].mxu0 %v9180_v3  ;;  %vm1792_vm1 = vcmp.gt.s32.totalorder %v9252_v21, %v9250_v4  ;;  %vm1791_vm2 = vcmp.gt.s32.totalorder %v9252_v21, %v9247_v60 }
 0x26d   : > { %7732 = vmatpush3.bf16.msra.mxu1 %v8951_v63 }
 0x26e   : > { %7734 = vmatprep.subr.bf16.mxu1 %v8957_v37 }
 0x271   : > { %7736 = vmatpush3.bf16.msra.mxu1 %v8957_v37 }
 0x272   : > { %7738 = vmatprep.subr.bf16.mxu1 %v8984_v9 }
 0x275   : > { %7740 = vmatpush3.bf16.msra.mxu1 %v8984_v9 }
 0x276   : > { %7742 = vmatprep.subr.bf16.mxu1 %v8993_v11 }
 0x279   : > { %7744 = vmatpush3.bf16.msra.mxu1 %v8993_v11 }
 0x27a   : > { %7746 = vmatprep.subr.bf16.mxu1 %v9025_v15 }
 0x27d   : > { %7748 = vmatpush3.bf16.msra.mxu1 %v9025_v15 }
 0x280   : > { %7027 = vmatmul.mubr.f32.vlgmr.msra.gmra.mrb[0].mxu1 %v8690_v42 }
 0x33e   : > { %v7070_v63 = vpop.f32.mrb[2].mxu0 }
 0x33f   : > { %v2309_v42 = vsel %vm1792_vm1, -3.4028235e+38, %v7070_v63  ;;  %v2298_v37 = vpop.f32.mrb[3].mxu0 }
 0x340   : > { %v2308_v59 = vsel %vm1791_vm2, -3.4028235e+38, %v2298_v37  ;;  %v2314_v9 = vsel %vm2310_vm3, %v2309_v42, -inf }
 0x341   : > { %2315 = vmax.xlane.f32.xlu1 %v2314_v9  ;;  %v2311_v11 = vsel %vm2310_vm3, %v2308_v59, -inf }
 0x342   : > { %2312 = vmax.xlane.f32.xlu0 %v2311_v11 }
 0x353   : > { %v9266_v15 = vpop.f32.mrb[0].mxu1 }
 0x354   : > { %v2343_v45 = vand.u32 4294901760, %v9266_v15  ;;  %v9269_v43 = vpop.f32.mrb[1].mxu1 }
 0x355   : > { %v2340_v14 = vand.u32 4294901760, %v9269_v43 }
 0x356   : > { %v2435_v18 = vsub.f32 %v9266_v15, %v2343_v45 }
 0x357   : > { %v9273_v6 = vpack.c.bf16 %v2343_v45, %v2340_v14  ;;  %v2428_v62 = vsub.f32 %v9269_v43, %v2340_v14 }
 0x358   : > { %v2436_v53 = vand.u32 4294901760, %v2435_v18 }
 0x359   : > { %7774 = vmatprep.subr.bf16.mxu1 %v9273_v6  ;;  %v2429_v61 = vand.u32 4294901760, %v2428_v62  ;;  %v7781_v27 = vpack.c.bf16 %v2435_v18, %v2428_v62 }
 0x35a   : > { %7776 = vmatpush3.bf16.msra.mxu1 %v9273_v6  ;;  %v2437_v32 = vsub.f32 %v2435_v18, %v2436_v53 }
 0x35b   : > { %v2430_v13 = vsub.f32 %v2428_v62, %v2429_v61  ;;  %v9278_v23 = vpack.c.bf16 %v2436_v53, %v2429_v61 }
 0x35c   : > { %v2438_v38 = vand.u32 4294901760, %v2437_v32 }
 0x35d   : > { %v2431_v56 = vand.u32 4294901760, %v2430_v13 }
 0x35f   : > { %v7777_v8 = vpack.c.bf16 %v2438_v38, %v2431_v56 }
 0x361   : > { %7778 = vmatprep.subr.bf16.mxu1 %v7777_v8 }
 0x3ce   : > { %v2316_v36 = vpop.xlane.xlu1 %2315 }
 0x3cf   : > { %v2318_v17 = vsub.f32 %v2309_v42, %v2316_v36  ;;  %v2313_v10 = vpop.xlane.xlu0 %2312 }
 0x3d0   : > { %v2317_v57 = vsub.f32 %v2308_v59, %v2313_v10 }
 0x3d1   : > { %v2321_v20 = vmul.f32 1.442695, %v2318_v17 }
 0x3d2   : > { %v2319_v16 = vmul.f32 1.442695, %v2317_v57 }
 0x3d3   : > { %8124 = vpow2.f32 %v2321_v20 }
 0x3d4   : > { %8126 = vpow2.f32 %v2319_v16 }
 0x3dd   : > { %v8125_v12 = vpop.eup %8124 }
 0x3de   : > { %v8127_v0 = vpop.eup %8126  ;;  %v2326_v44 = vsel %vm2310_vm3, %v8125_v12, 0.0 }
 0x3df   : > { %2327 = vadd.xlane.f32.xlu1 %v2326_v44  ;;  %v2323_v25 = vsel %vm2310_vm3, %v8127_v0, 0.0 }
 0x3e0   : > { %2324 = vadd.xlane.f32.xlu0 %v2323_v25 }
 0x3f0   : > { %2847 = vrot.lane.b32.xlu1 %v9183_v54, %s8358_s4 }
 0x3f4   : > { %2841 = vrot.lane.b32.xlu1 %v9527_v19, %s8358_s4 }
 0x3f6   : > { %2845 = vrot.lane.b32.xlu0 %v9188_v26, %s8358_s4 }
 0x3f8   : > { %2843 = vrot.lane.b32.xlu1 %v9173_v51, %s8358_s4 }
 0x46c   : > { %v2328_v33 = vpop.xlane.xlu1 %2327 }
 0x46d   : > { %8128 = vrcp.f32 %v2328_v33  ;;  %v2325_v3 = vpop.xlane.xlu0 %2324 }
 0x46e   : > { %8130 = vrcp.f32 %v2325_v3 }
 0x470   : > { %v2848_v47 = vpop.permute.xlu1 %2847 }
 0x471   : > { %v2846_v48 = vpop.permute.xlu0 %2845  ;;  %v2855_v50 = vsel %vm1793_vm0, %v2848_v47, 0 }
 0x472   : > { %v2853_v52 = vsel %vm1793_vm0, %v2846_v48, 0  ;;  %v2861_v22 = vand.u32 4294901760, %v2855_v50 }
 0x473   : > { %v2858_v63 = vand.u32 4294901760, %v2853_v52 }
 0x474   : > { %v2842_v34 = vpop.permute.xlu1 %2841  ;;  %v2953_v37 = vsub.f32 %v2855_v50, %v2861_v22 }
 0x475   : > { %v2849_v1 = vsel %vm1793_vm0, %v2842_v34, 0  ;;  %v2946_v59 = vsub.f32 %v2853_v52, %v2858_v63  ;;  %v7797_v61 = vpack.c.bf16 %v2861_v22, %v2858_v63 }
 0x476   : > { %v2924_v42 = vand.u32 4294901760, %v2849_v1  ;;  %v2954_v14 = vand.u32 4294901760, %v2953_v37 }
 0x477   : > { %v8129_v31 = vpop.eup %8128  ;;  %v2947_v18 = vand.u32 4294901760, %v2946_v59  ;;  %v7805_v20 = vpack.c.bf16 %v2953_v37, %v2946_v59 }
 0x478   : > { %v8131_v46 = vpop.eup %8130  ;;  %v2332_v49 = vmul.f32 %v8129_v31, %v8125_v12  ;;  %v2844_v9 = vpop.permute.xlu1 %2843  ;;  %v2925_v11 = vsub.f32 %v2849_v1, %v2924_v42  ;;  %v2955_v32 = vsub.f32 %v2953_v37, %v2954_v14 }
 0x479   : > { %v2331_v2 = vmul.f32 %v8131_v46, %v8127_v0  ;;  %v2851_v45 = vsel %vm1793_vm0, %v2844_v9, 0 }
 0x47a   : > { %v2337_v7 = vsel %vm2310_vm3, %v2332_v49, 0  ;;  %v2926_v62 = vand.u32 4294901760, %v2925_v11  ;;  %v2934_v53 = vand.u32 4294901760, %v2851_v45  ;;  %v2956_v56 = vand.u32 4294901760, %v2955_v32 }
 0x47b   : > { %v2334_v5 = vsel %vm2310_vm3, %v2331_v2, 0  ;;  %v2416_v39 = vand.u32 4294901760, %v2337_v7 }
 0x47c   : > { %v2406_v35 = vand.u32 4294901760, %v2334_v5  ;;  %v2935_v13 = vsub.f32 %v2851_v45, %v2934_v53  ;;  %v2927_v38 = vsub.f32 %v2925_v11, %v2926_v62 }
 0x47d   : > { %v2417_v24 = vsub.f32 %v2337_v7, %v2416_v39 }
 0x47e   : > { %v2407_v28 = vsub.f32 %v2334_v5, %v2406_v35  ;;  %v2928_v36 = vand.u32 4294901760, %v2927_v38 }
 0x47f   : > { %v2418_v41 = vand.u32 4294901760, %v2417_v24 }
 0x480   : > { %v2408_v29 = vand.u32 4294901760, %v2407_v28 }
 0x481   : > { %v2419_v58 = vsub.f32 %v2417_v24, %v2418_v41 }
 0x482   : > { %v2409_v30 = vsub.f32 %v2407_v28, %v2408_v29 }
 0x483   : > { %v2420_v40 = vand.u32 4294901760, %v2419_v58 }
 0x484   : > { %v2410_v55 = vand.u32 4294901760, %v2409_v30 }
 0x486   : > { %7075 = vmatprep.mubr.f32.mxu1 %v2410_v55 }
 0x487   : > { %7076 = vmatmul.mubr.f32.vlgmr.msra.gmra.mrb[2].mxu1 %v2420_v40 }
 0x488   : > { %7780 = vmatpush3.bf16.msra.mxu1 %v7777_v8  ;;  %7082 = vmatprep.mubr.f32.mxu1 %v2406_v35  ;;  %v2936_v8 = vand.u32 4294901760, %v2935_v13 }
 0x489   : > { %7782 = vmatprep.subr.bf16.mxu1 %v7781_v27 }
 0x48a   : > { %v2937_v10 = vsub.f32 %v2935_v13, %v2936_v8 }
 0x48c   : > { %v2938_v57 = vand.u32 4294901760, %v2937_v10 }
 0x48f   : > { %7083 = vmatmul.mubr.f32.vlgmr.msra.gmra.mrb[2].mxu1 %v2416_v39 }
 0x490   : > { %7784 = vmatpush3.bf16.msra.mxu1 %v7781_v27  ;;  %7089 = vmatprep.mubr.f32.mxu1 %v2407_v28  ;;  %v2948_v27 = vsub.f32 %v2946_v59, %v2947_v18 }
 0x491   : > { %7786 = vmatprep.subr.bf16.mxu1 %v9273_v6 }
 0x497   : > { %7090 = vmatmul.mubr.f32.vlgmr.msra.gmra.mrb[2].mxu1 %v2417_v24 }
 0x498   : > { %7788 = vmatpush3.bf16.msra.mxu1 %v9273_v6  ;;  %7096 = vmatprep.mubr.f32.mxu1 %v2408_v29 }
 0x499   : > { %7790 = vmatprep.subr.bf16.mxu1 %v9278_v23 }
 0x49f   : > { %7097 = vmatmul.mubr.f32.vlgmr.msra.gmra.mrb[2].mxu1 %v2418_v41 }
 0x4a0   : > { %7792 = vmatpush3.bf16.msra.mxu1 %v9278_v23  ;;  %7103 = vmatprep.mubr.f32.mxu1 %v2406_v35  ;;  %v2949_v23 = vand.u32 4294901760, %v2948_v27 }
 0x4a1   : > { %7794 = vmatprep.subr.bf16.mxu1 %v9273_v6 }
 0x4a2   : > { %v7801_v17 = vpack.c.bf16 %v2956_v56, %v2949_v23 }
 0x4a7   : > { %7104 = vmatmul.mubr.f32.vlgmr.msra.gmra.mrb[2].mxu1 %v2416_v39 }
 0x4a8   : > { %7796 = vmatpush3.bf16.msra.mxu1 %v9273_v6  ;;  %7110 = vmatprep.mubr.f32.mxu1 %v2406_v35  ;;  %v7813_v6 = vpack.c.bf16 %v2954_v14, %v2947_v18 }
 0x4a9   : > { %7798 = vmatprep.subr.bf16.mxu1 %v7797_v61 }
 0x4af   : > { %7111 = vmatmul.mubr.f32.vlgmr.msra.gmra.mrb[2].mxu1 %v2416_v39 }
 0x4b0   : > { %7117 = vmatprep.mubr.f32.mxu1 %v2928_v36 }
 0x4b1   : > { %7800 = vmatpush3.bf16.xpose.msra.mxu1 %v7797_v61 }
 0x4b2   : > { %7802 = vmatprep.subr.bf16.mxu1 %v7801_v17 }
 0x4b8   : > { %7118 = vmatmul.mubr.f32.vlgmr.msra.gmra.mrb[4].mxu1 %v2938_v57 }
 0x4b9   : > { %7804 = vmatpush3.bf16.xpose.msra.mxu1 %v7801_v17  ;;  %7124 = vmatprep.mubr.f32.mxu1 %v2924_v42 }
 0x4ba   : > { %7806 = vmatprep.subr.bf16.mxu1 %v7805_v20 }
 0x4c0   : > { %7125 = vmatmul.mubr.f32.vlgmr.msra.gmra.mrb[4].mxu1 %v2934_v53 }
 0x4c1   : > { %7808 = vmatpush3.bf16.xpose.msra.mxu1 %v7805_v20  ;;  %7131 = vmatprep.mubr.f32.mxu1 %v2925_v11 }
 0x4c2   : > { %7810 = vmatprep.subr.bf16.mxu1 %v7797_v61 }
 0x4c8   : > { %7132 = vmatmul.mubr.f32.vlgmr.msra.gmra.mrb[4].mxu1 %v2935_v13 }
 0x4c9   : > { %7812 = vmatpush3.bf16.xpose.msra.mxu1 %v7797_v61  ;;  %7138 = vmatprep.mubr.f32.mxu1 %v2926_v62 }
 0x4ca   : > { %7814 = vmatprep.subr.bf16.mxu1 %v7813_v6 }
 0x4d0   : > { %7139 = vmatmul.mubr.f32.vlgmr.msra.gmra.mrb[4].mxu1 %v2936_v8 }
 0x4d1   : > { %7816 = vmatpush3.bf16.xpose.msra.mxu1 %v7813_v6  ;;  %7145 = vmatprep.mubr.f32.mxu1 %v2924_v42 }
 0x4d2   : > { %7818 = vmatprep.subr.bf16.mxu1 %v7797_v61 }
 0x4d8   : > { %7146 = vmatmul.mubr.f32.vlgmr.msra.gmra.mrb[4].mxu1 %v2934_v53 }
 0x4d9   : > { %7820 = vmatpush3.bf16.xpose.msra.mxu1 %v7797_v61  ;;  %7152 = vmatprep.mubr.f32.mxu1 %v2924_v42 }
 0x4e0   : > { %7153 = vmatmul.mubr.f32.vlgmr.msra.gmra.mrb[4].mxu1 %v2934_v53 }
 0x582   : > { %v9302_v16 = vpop.f32.mrb[2].mxu1 }
 0x583   : > { %v9304_v12 = vpop.f32.mrb[3].mxu1 }
 0x5b3   : > { %v7154_v0 = vpop.f32.mrb[4].mxu1 }
 0x5b4   : > { %v3360_v44 = vsel %vm1792_vm1, -3.4028235e+38, %v7154_v0  ;;  %v3349_v25 = vpop.f32.mrb[5].mxu1 }
 0x5b5   : > { %v3359_v33 = vsel %vm1791_vm2, -3.4028235e+38, %v3349_v25  ;;  %v3364_v3 = vsel %vm2310_vm3, %v3360_v44, -inf }
 0x5b6   : > { %3365 = vmax.xlane.f32.xlu1 %v3364_v3  ;;  %v3361_v31 = vsel %vm2310_vm3, %v3359_v33, -inf }
 0x5b7   : > { %3362 = vmax.xlane.f32.xlu0 %v3361_v31 }
 0x5c7   : > { %3387 = vrot.lane.b32.xlu1 %v9266_v15, %s8358_s4 }
 0x5cb   : > { %3903 = vrot.lane.b32.xlu1 %v9188_v26, %s8359_s5 }
 0x5cf   : > { %3905 = vrot.lane.b32.xlu1 %v9183_v54, %s8359_s5 }
 0x5d3   : > { %3901 = vrot.lane.b32.xlu1 %v9173_v51, %s8359_s5 }
 0x643   : > { %v3366_v46 = vpop.xlane.xlu1 %3365 }
 0x644   : > { %v3368_v49 = vsub.f32 %v3360_v44, %v3366_v46  ;;  %v3363_v2 = vpop.xlane.xlu0 %3362 }
 0x645   : > { %v3367_v7 = vsub.f32 %v3359_v33, %v3363_v2 }
 0x646   : > { %v3371_v5 = vmul.f32 1.442695, %v3368_v49 }
 0x647   : > { %v3369_v39 = vmul.f32 1.442695, %v3367_v7  ;;  %v3388_v29 = vpop.permute.xlu1 %3387 }
 0x648   : > { %8132 = vpow2.f32 %v3371_v5  ;;  %v3401_v30 = vand.u32 4294901760, %v3388_v29 }
 0x649   : > { %8134 = vpow2.f32 %v3369_v39 }
 0x64a   : > { %v3493_v40 = vsub.f32 %v3388_v29, %v3401_v30 }
 0x64b   : > { %v3904_v10 = vpop.permute.xlu1 %3903 }
 0x64c   : > { %v3494_v48 = vand.u32 4294901760, %v3493_v40  ;;  %v3911_v44 = vsel %vm1793_vm0, %v3904_v10, 0 }
 0x64d   : > { %v3916_v3 = vand.u32 4294901760, %v3911_v44 }
 0x64e   : > { %v3495_v63 = vsub.f32 %v3493_v40, %v3494_v48 }
 0x64f   : > { %v3906_v57 = vpop.permute.xlu1 %3905  ;;  %v4004_v2 = vsub.f32 %v3911_v44, %v3916_v3 }
 0x650   : > { %v3496_v18 = vand.u32 4294901760, %v3495_v63  ;;  %v3913_v0 = vsel %vm1793_vm0, %v3906_v57, 0 }
 0x651   : > { %v3919_v33 = vand.u32 4294901760, %v3913_v0 }
 0x652   : > { %v8133_v35 = vpop.eup %8132 }
 0x653   : > { %v3376_v24 = vsel %vm2310_vm3, %v8133_v35, 0.0  ;;  %v8135_v28 = vpop.eup %8134  ;;  %v4011_v46 = vsub.f32 %v3913_v0, %v3919_v33  ;;  %v3902_v49 = vpop.permute.xlu1 %3901 }
 0x654   : > { %3377 = vadd.xlane.f32.xlu0 %v3376_v24  ;;  %v3373_v41 = vsel %vm2310_vm3, %v8135_v28, 0.0  ;;  %v3909_v5 = vsel %vm1793_vm0, %v3902_v49, 0 }
 0x655   : > { %v4012_v39 = vand.u32 4294901760, %v4011_v46  ;;  %v3992_v24 = vand.u32 4294901760, %v3909_v5  ;;  %v7853_v63 = vpack.c.bf16 %v4011_v46, %v4004_v2 }
 0x657   : > { %v4013_v29 = vsub.f32 %v4011_v46, %v4012_v39 }
 0x658   : > { %3374 = vadd.xlane.f32.xlu0 %v3373_v41  ;;  %v7845_v41 = vpack.c.bf16 %v3919_v33, %v3916_v3 }
 0x66e   : > { %3385 = vrot.lane.b32.xlu0 %v9269_v43, %s8358_s4 }
 0x672   : > { %3899 = vrot.lane.b32.xlu0 %v9527_v19, %s8359_s5 }
 0x6e1   : > { %v3378_v58 = vpop.xlane.xlu0 %3377 }
 0x6e2   : > { %8136 = vrcp.f32 %v3378_v58 }
 0x6e5   : > { %v3375_v55 = vpop.xlane.xlu0 %3374 }
 0x6e6   : > { %8138 = vrcp.f32 %v3375_v55 }
 0x6e9   : > { %v3386_v47 = vpop.permute.xlu0 %3385 }
 0x6ea   : > { %v3398_v34 = vand.u32 4294901760, %v3386_v47 }
 0x6ec   : > { %v8137_v50 = vpop.eup %8136  ;;  %v9328_v52 = vpack.c.bf16 %v3401_v30, %v3398_v34  ;;  %v3486_v1 = vsub.f32 %v3386_v47, %v3398_v34  ;;  %v3993_v30 = vsub.f32 %v3909_v5, %v3992_v24 }
 0x6ed   : > { %v3382_v22 = vmul.f32 %v8137_v50, %v8133_v35  ;;  %v3900_v6 = vpop.permute.xlu0 %3899  ;;  %v4005_v35 = vand.u32 4294901760, %v4004_v2 }
 0x6ee   : > { %v3487_v42 = vand.u32 4294901760, %v3486_v1  ;;  %7822 = vmatprep.subr.bf16.mxu0 %v9328_v52  ;;  %v7829_v17 = vpack.c.bf16 %v3493_v40, %v3486_v1  ;;  %v3907_v25 = vsel %vm1793_vm0, %v3900_v6, 0  ;;  %v4014_v40 = vand.u32 4294901760, %v4013_v29 }
 0x6ef   : > { %7824 = vmatpush3.bf16.msra.mxu0 %v9328_v52  ;;  %v3395_v37 = vsel %vm2310_vm3, %v3382_v22, 0  ;;  %v3982_v31 = vand.u32 4294901760, %v3907_v25  ;;  %v4006_v58 = vsub.f32 %v4004_v2, %v4005_v35  ;;  %v3994_v47 = vand.u32 4294901760, %v3993_v30 }
 0x6f0   : > { %v8139_v59 = vpop.eup %8138  ;;  %v3488_v9 = vsub.f32 %v3486_v1, %v3487_v42  ;;  %v9333_v11 = vand.u32 4294901760, %v3395_v37  ;;  %v7837_v20 = vpack.c.bf16 %v3494_v48, %v3487_v42 }
 0x6f1   : > { %v3381_v45 = vmul.f32 %v8139_v59, %v8135_v28  ;;  %v3983_v7 = vsub.f32 %v3907_v25, %v3982_v31  ;;  %v4007_v34 = vand.u32 4294901760, %v4006_v58  ;;  %v3995_v1 = vsub.f32 %v3993_v30, %v3994_v47 }
 0x6f2   : > { %v3489_v14 = vand.u32 4294901760, %v3488_v9  ;;  %v3475_v62 = vsub.f32 %v3395_v37, %v9333_v11 }
 0x6f3   : > { %v3392_v53 = vsel %vm2310_vm3, %v3381_v45, 0  ;;  %v3984_v28 = vand.u32 4294901760, %v3983_v7  ;;  %v7849_v50 = vpack.c.bf16 %v4014_v40, %v4007_v34  ;;  %v3996_v22 = vand.u32 4294901760, %v3995_v1 }
 0x6f4   : > { %v7825_v61 = vpack.c.bf16 %v3496_v18, %v3489_v14  ;;  %v3464_v32 = vand.u32 4294901760, %v3392_v53  ;;  %v3476_v27 = vand.u32 4294901760, %v3475_v62 }
 0x6f5   : > { %v3985_v55 = vsub.f32 %v3983_v7, %v3984_v28 }
 0x6f6   : > { %7826 = vmatprep.subr.bf16.mxu0 %v7825_v61  ;;  %v3465_v13 = vsub.f32 %v3392_v53, %v3464_v32  ;;  %v3477_v23 = vsub.f32 %v3475_v62, %v3476_v27 }
 0x6f7   : > { %v3986_v48 = vand.u32 4294901760, %v3985_v55 }
 0x6f8   : > { %v3466_v38 = vand.u32 4294901760, %v3465_v13  ;;  %v3478_v36 = vand.u32 4294901760, %v3477_v23 }
 0x6fa   : > { %v3467_v56 = vsub.f32 %v3465_v13, %v3466_v38 }
 0x6fc   : > { %v3468_v8 = vand.u32 4294901760, %v3467_v56 }
 0x6fe   : > { %7159 = vmatprep.mubr.f32.mxu0 %v3468_v8 }
 0x6ff   : > { %7160 = vmatmul.mubr.f32.vlgmr.msra.gmra.mrb[4].mxu0 %v3478_v36 }
 0x700   : > { %7828 = vmatpush3.bf16.msra.mxu0 %v7825_v61  ;;  %7166 = vmatprep.mubr.f32.mxu0 %v3464_v32 }
 0x701   : > { %7830 = vmatprep.subr.bf16.mxu0 %v7829_v17 }
 0x707   : > { %7167 = vmatmul.mubr.f32.vlgmr.msra.gmra.mrb[4].mxu0 %v9333_v11 }
 0x708   : > { %7832 = vmatpush3.bf16.msra.mxu0 %v7829_v17  ;;  %7173 = vmatprep.mubr.f32.mxu0 %v3465_v13 }
 0x709   : > { %7834 = vmatprep.subr.bf16.mxu0 %v9328_v52 }
 0x70f   : > { %7174 = vmatmul.mubr.f32.vlgmr.msra.gmra.mrb[4].mxu0 %v3475_v62 }
 0x710   : > { %7836 = vmatpush3.bf16.msra.mxu0 %v9328_v52  ;;  %7180 = vmatprep.mubr.f32.mxu0 %v3466_v38 }
 0x711   : > { %7838 = vmatprep.subr.bf16.mxu0 %v7837_v20 }
 0x717   : > { %7181 = vmatmul.mubr.f32.vlgmr.msra.gmra.mrb[4].mxu0 %v3476_v27 }
 0x718   : > { %7840 = vmatpush3.bf16.msra.mxu0 %v7837_v20  ;;  %7187 = vmatprep.mubr.f32.mxu0 %v3464_v32 }
 0x719   : > { %7842 = vmatprep.subr.bf16.mxu0 %v9328_v52 }
 0x71f   : > { %7188 = vmatmul.mubr.f32.vlgmr.msra.gmra.mrb[4].mxu0 %v9333_v11 }
 0x720   : > { %7844 = vmatpush3.bf16.msra.mxu0 %v9328_v52  ;;  %7194 = vmatprep.mubr.f32.mxu0 %v3464_v32  ;;  %v7861_v52 = vpack.c.bf16 %v4012_v39, %v4005_v35 }
 0x721   : > { %7846 = vmatprep.subr.bf16.mxu0 %v7845_v41 }
 0x727   : > { %7195 = vmatmul.mubr.f32.vlgmr.msra.gmra.mrb[4].mxu0 %v9333_v11 }
 0x728   : > { %7201 = vmatprep.mubr.f32.mxu0 %v3986_v48 }
 0x729   : > { %7848 = vmatpush3.bf16.xpose.msra.mxu0 %v7845_v41 }
 0x72a   : > { %7850 = vmatprep.subr.bf16.mxu0 %v7849_v50 }
 0x730   : > { %7202 = vmatmul.mubr.f32.vlgmr.msra.gmra.mrb[6].mxu0 %v3996_v22 }
 0x731   : > { %7852 = vmatpush3.bf16.xpose.msra.mxu0 %v7849_v50  ;;  %7208 = vmatprep.mubr.f32.mxu0 %v3982_v31 }
 0x732   : > { %7854 = vmatprep.subr.bf16.mxu0 %v7853_v63 }
 0x738   : > { %7209 = vmatmul.mubr.f32.vlgmr.msra.gmra.mrb[6].mxu0 %v3992_v24 }
 0x739   : > { %7856 = vmatpush3.bf16.xpose.msra.mxu0 %v7853_v63  ;;  %7215 = vmatprep.mubr.f32.mxu0 %v3983_v7 }
 0x73a   : > { %7858 = vmatprep.subr.bf16.mxu0 %v7845_v41 }
 0x740   : > { %7216 = vmatmul.mubr.f32.vlgmr.msra.gmra.mrb[6].mxu0 %v3993_v30 }
 0x741   : > { %7860 = vmatpush3.bf16.xpose.msra.mxu0 %v7845_v41  ;;  %7222 = vmatprep.mubr.f32.mxu0 %v3984_v28 }
 0x742   : > { %7862 = vmatprep.subr.bf16.mxu0 %v7861_v52 }
 0x748   : > { %7223 = vmatmul.mubr.f32.vlgmr.msra.gmra.mrb[6].mxu0 %v3994_v47 }
 0x749   : > { %7864 = vmatpush3.bf16.xpose.msra.mxu0 %v7861_v52  ;;  %7229 = vmatprep.mubr.f32.mxu0 %v3982_v31 }
 0x74a   : > { %7866 = vmatprep.subr.bf16.mxu0 %v7845_v41 }
 0x750   : > { %7230 = vmatmul.mubr.f32.vlgmr.msra.gmra.mrb[6].mxu0 %v3992_v24 }
 0x751   : > { %7868 = vmatpush3.bf16.xpose.msra.mxu0 %v7845_v41  ;;  %7236 = vmatprep.mubr.f32.mxu0 %v3982_v31 }
 0x758   : > { %7237 = vmatmul.mubr.f32.vlgmr.msra.gmra.mrb[6].mxu0 %v3992_v24 }
 0x7fa   : > { %v9348_v42 = vpop.f32.mrb[4].mxu0 }
 0x7fb   : > { %v9350_v37 = vpop.f32.mrb[5].mxu0 }
 0x82b   : > { %v7238_v59 = vpop.f32.mrb[6].mxu0 }
 0x82c   : > { %v4418_v9 = vsel %vm1792_vm1, -3.4028235e+38, %v7238_v59  ;;  %v4407_v11 = vpop.f32.mrb[7].mxu0 }
 0x82d   : > { %v4417_v45 = vsel %vm1791_vm2, -3.4028235e+38, %v4407_v11  ;;  %v4422_v14 = vsel %vm2310_vm3, %v4418_v9, -inf }
 0x82e   : > { %4423 = vmax.xlane.f32.xlu1 %v4422_v14  ;;  %v4419_v18 = vsel %vm2310_vm3, %v4417_v45, -inf }
 0x82f   : > { %4420 = vmax.xlane.f32.xlu0 %v4419_v18 }
 0x83f   : > { %4443 = vrot.lane.b32.xlu1 %v9266_v15, %s8359_s5 }
 0x843   : > { %4959 = vrot.lane.b32.xlu1 %v9188_v26, %s8360_s13 }
 0x847   : > { %4961 = vrot.lane.b32.xlu1 %v9183_v54, %s8360_s13 }
 0x84b   : > { %4957 = vrot.lane.b32.xlu1 %v9173_v51, %s8360_s13 }
 0x8bb   : > { %v4424_v62 = vpop.xlane.xlu1 %4423 }
 0x8bc   : > { %v4426_v53 = vsub.f32 %v4418_v9, %v4424_v62  ;;  %v4421_v61 = vpop.xlane.xlu0 %4420 }
 0x8bd   : > { %v4425_v32 = vsub.f32 %v4417_v45, %v4421_v61 }
 0x8be   : > { %v4429_v27 = vmul.f32 1.442695, %v4426_v53 }
 0x8bf   : > { %v4427_v13 = vmul.f32 1.442695, %v4425_v32  ;;  %v4444_v51 = vpop.permute.xlu1 %4443 }
 0x8c0   : > { %8140 = vpow2.f32 %v4429_v27  ;;  %v4457_v8 = vand.u32 4294901760, %v4444_v51 }
 0x8c1   : > { %8142 = vpow2.f32 %v4427_v13 }
 0x8c2   : > { %v4549_v17 = vsub.f32 %v4444_v51, %v4457_v8 }
 0x8c3   : > { %v4960_v34 = vpop.permute.xlu1 %4959 }
 0x8c4   : > { %v4550_v57 = vand.u32 4294901760, %v4549_v17  ;;  %v4967_v52 = vsel %vm1793_vm0, %v4960_v34, 0 }
 0x8c5   : > { %v4972_v11 = vand.u32 4294901760, %v4967_v52 }
 0x8c6   : > { %v4551_v33 = vsub.f32 %v4549_v17, %v4550_v57 }
 0x8c7   : > { %v4962_v50 = vpop.permute.xlu1 %4961  ;;  %v5060_v62 = vsub.f32 %v4967_v52, %v4972_v11 }
 0x8c8   : > { %v4552_v5 = vand.u32 4294901760, %v4551_v33  ;;  %v4969_v63 = vsel %vm1793_vm0, %v4962_v50, 0 }
 0x8c9   : > { %v4975_v9 = vand.u32 4294901760, %v4969_v63  ;;  %v5061_v27 = vand.u32 4294901760, %v5060_v62 }
 0x8ca   : > { %v8141_v38 = vpop.eup %8140 }
 0x8cb   : > { %v4434_v23 = vsel %vm2310_vm3, %v8141_v38, 0.0  ;;  %v8143_v56 = vpop.eup %8142  ;;  %v5067_v14 = vsub.f32 %v4969_v63, %v4975_v9  ;;  %v4958_v18 = vpop.permute.xlu1 %4957 }
 0x8cc   : > { %4435 = vadd.xlane.f32.xlu0 %v4434_v23  ;;  %v4431_v26 = vsel %vm2310_vm3, %v8143_v56, 0.0  ;;  %v4965_v61 = vsel %vm1793_vm0, %v4958_v18, 0  ;;  %v7893_v23 = vpack.c.bf16 %v4975_v9, %v4972_v11 }
 0x8cd   : > { %v5068_v32 = vand.u32 4294901760, %v5067_v14  ;;  %v5048_v13 = vand.u32 4294901760, %v4965_v61 }
 0x8cf   : > { %v5049_v51 = vsub.f32 %v4965_v61, %v5048_v13 }
 0x8d0   : > { %4432 = vadd.xlane.f32.xlu0 %v4431_v26  ;;  %v5062_v26 = vsub.f32 %v5060_v62, %v5061_v27 }
 0x8e6   : > { %4441 = vrot.lane.b32.xlu0 %v9269_v43, %s8359_s5 }
 0x8ea   : > { %4955 = vrot.lane.b32.xlu0 %v9527_v19, %s8360_s13 }
 0x959   : > { %v4436_v54 = vpop.xlane.xlu0 %4435 }
 0x95a   : > { %8144 = vrcp.f32 %v4436_v54 }
 0x95d   : > { %v4433_v36 = vpop.xlane.xlu0 %4432 }
 0x95e   : > { %8146 = vrcp.f32 %v4433_v36  ;;  %v5050_v36 = vand.u32 4294901760, %v5049_v51 }
 0x961   : > { %v4442_v10 = vpop.permute.xlu0 %4441 }
 0x962   : > { %v4454_v20 = vand.u32 4294901760, %v4442_v10 }
 0x964   : > { %v8145_v6 = vpop.eup %8144  ;;  %v9374_v0 = vpack.c.bf16 %v4457_v8, %v4454_v20  ;;  %v4542_v44 = vsub.f32 %v4442_v10, %v4454_v20  ;;  %v5063_v10 = vand.u32 4294901760, %v5062_v26  ;;  %v5051_v20 = vsub.f32 %v5049_v51, %v5050_v36 }
 0x965   : > { %v4440_v25 = vmul.f32 %v8145_v6, %v8141_v38  ;;  %v4956_v22 = vpop.permute.xlu0 %4955 }
 0x966   : > { %v4543_v3 = vand.u32 4294901760, %v4542_v44  ;;  %7870 = vmatprep.subr.bf16.mxu1 %v9374_v0  ;;  %v7877_v48 = vpack.c.bf16 %v4549_v17, %v4542_v44  ;;  %v4963_v59 = vsel %vm1793_vm0, %v4956_v22, 0  ;;  %v5052_v6 = vand.u32 4294901760, %v5051_v20 }
 0x967   : > { %7872 = vmatpush3.bf16.msra.mxu1 %v9374_v0  ;;  %v4451_v19 = vsel %vm2310_vm3, %v4440_v25, 0  ;;  %v5038_v45 = vand.u32 4294901760, %v4963_v59 }
 0x968   : > { %v8147_v31 = vpop.eup %8146  ;;  %v4544_v46 = vsub.f32 %v4542_v44, %v4543_v3  ;;  %v9379_v49 = vand.u32 4294901760, %v4451_v19  ;;  %v7885_v1 = vpack.c.bf16 %v4550_v57, %v4543_v3  ;;  %v7901_v44 = vpack.c.bf16 %v5067_v14, %v5060_v62 }
 0x969   : > { %v4439_v2 = vmul.f32 %v8147_v31, %v8143_v56  ;;  %v5039_v53 = vsub.f32 %v4963_v59, %v5038_v45  ;;  %v5069_v56 = vsub.f32 %v5067_v14, %v5068_v32 }
 0x96a   : > { %v4545_v7 = vand.u32 4294901760, %v4544_v46  ;;  %v4531_v39 = vsub.f32 %v4451_v19, %v9379_v49 }
 0x96b   : > { %v4448_v35 = vsel %vm2310_vm3, %v4439_v2, 0  ;;  %v5040_v38 = vand.u32 4294901760, %v5039_v53  ;;  %v5070_v8 = vand.u32 4294901760, %v5069_v56 }
 0x96c   : > { %v7873_v24 = vpack.c.bf16 %v4552_v5, %v4545_v7  ;;  %v4520_v28 = vand.u32 4294901760, %v4448_v35  ;;  %v4532_v41 = vand.u32 4294901760, %v4531_v39 }
 0x96d   : > { %v5041_v54 = vsub.f32 %v5039_v53, %v5040_v38  ;;  %v7897_v57 = vpack.c.bf16 %v5070_v8, %v5063_v10 }
 0x96e   : > { %7874 = vmatprep.subr.bf16.mxu1 %v7873_v24  ;;  %v4521_v29 = vsub.f32 %v4448_v35, %v4520_v28  ;;  %v4533_v30 = vsub.f32 %v4531_v39, %v4532_v41 }
 0x96f   : > { %v5042_v17 = vand.u32 4294901760, %v5041_v54 }
 0x970   : > { %v4522_v58 = vand.u32 4294901760, %v4521_v29  ;;  %v4534_v47 = vand.u32 4294901760, %v4533_v30 }
 0x972   : > { %v4523_v55 = vsub.f32 %v4521_v29, %v4522_v58 }
 0x974   : > { %v4524_v40 = vand.u32 4294901760, %v4523_v55 }
 0x976   : > { %7243 = vmatprep.mubr.f32.mxu1 %v4524_v40 }
 0x977   : > { %7244 = vmatmul.mubr.f32.vlgmr.msra.gmra.mrb[6].mxu1 %v4534_v47 }
 0x978   : > { %7876 = vmatpush3.bf16.msra.mxu1 %v7873_v24  ;;  %7250 = vmatprep.mubr.f32.mxu1 %v4520_v28 }
 0x979   : > { %7878 = vmatprep.subr.bf16.mxu1 %v7877_v48 }
 0x97f   : > { %7251 = vmatmul.mubr.f32.vlgmr.msra.gmra.mrb[6].mxu1 %v9379_v49 }
 0x980   : > { %7880 = vmatpush3.bf16.msra.mxu1 %v7877_v48  ;;  %7257 = vmatprep.mubr.f32.mxu1 %v4521_v29 }
 0x981   : > { %7882 = vmatprep.subr.bf16.mxu1 %v9374_v0 }
 0x987   : > { %7258 = vmatmul.mubr.f32.vlgmr.msra.gmra.mrb[6].mxu1 %v4531_v39 }
 0x988   : > { %7884 = vmatpush3.bf16.msra.mxu1 %v9374_v0  ;;  %7264 = vmatprep.mubr.f32.mxu1 %v4522_v58 }
 0x989   : > { %7886 = vmatprep.subr.bf16.mxu1 %v7885_v1 }
 0x98f   : > { %7265 = vmatmul.mubr.f32.vlgmr.msra.gmra.mrb[6].mxu1 %v4532_v41 }
 0x990   : > { %7888 = vmatpush3.bf16.msra.mxu1 %v7885_v1  ;;  %7271 = vmatprep.mubr.f32.mxu1 %v4520_v28 }
 0x991   : > { %7890 = vmatprep.subr.bf16.mxu1 %v9374_v0 }
 0x997   : > { %7272 = vmatmul.mubr.f32.vlgmr.msra.gmra.mrb[6].mxu1 %v9379_v49 }
 0x998   : > { %7892 = vmatpush3.bf16.msra.mxu1 %v9374_v0  ;;  %7278 = vmatprep.mubr.f32.mxu1 %v4520_v28  ;;  %v7909_v0 = vpack.c.bf16 %v5068_v32, %v5061_v27 }
 0x999   : > { %7894 = vmatprep.subr.bf16.mxu1 %v7893_v23 }
 0x99f   : > { %7279 = vmatmul.mubr.f32.vlgmr.msra.gmra.mrb[6].mxu1 %v9379_v49 }
 0x9a0   : > { %7285 = vmatprep.mubr.f32.mxu1 %v5042_v17 }
 0x9a1   : > { %7896 = vmatpush3.bf16.xpose.msra.mxu1 %v7893_v23 }
 0x9a2   : > { %7898 = vmatprep.subr.bf16.mxu1 %v7897_v57 }
 0x9a8   : > { %7286 = vmatmul.mubr.f32.vlgmr.msra.gmra.mrb[8].mxu1 %v5052_v6 }
 0x9a9   : > { %7900 = vmatpush3.bf16.xpose.msra.mxu1 %v7897_v57  ;;  %7292 = vmatprep.mubr.f32.mxu1 %v5038_v45 }
 0x9aa   : > { %7902 = vmatprep.subr.bf16.mxu1 %v7901_v44 }
 0x9b0   : > { %7293 = vmatmul.mubr.f32.vlgmr.msra.gmra.mrb[8].mxu1 %v5048_v13 }
 0x9b1   : > { %7904 = vmatpush3.bf16.xpose.msra.mxu1 %v7901_v44  ;;  %7299 = vmatprep.mubr.f32.mxu1 %v5039_v53 }
 0x9b2   : > { %7906 = vmatprep.subr.bf16.mxu1 %v7893_v23 }
 0x9b8   : > { %7300 = vmatmul.mubr.f32.vlgmr.msra.gmra.mrb[8].mxu1 %v5049_v51 }
 0x9b9   : > { %7908 = vmatpush3.bf16.xpose.msra.mxu1 %v7893_v23  ;;  %7306 = vmatprep.mubr.f32.mxu1 %v5040_v38 }
 0x9ba   : > { %7910 = vmatprep.subr.bf16.mxu1 %v7909_v0 }
 0x9c0   : > { %7307 = vmatmul.mubr.f32.vlgmr.msra.gmra.mrb[8].mxu1 %v5050_v36 }
 0x9c1   : > { %7912 = vmatpush3.bf16.xpose.msra.mxu1 %v7909_v0  ;;  %7313 = vmatprep.mubr.f32.mxu1 %v5038_v45 }
 0x9c2   : > { %7914 = vmatprep.subr.bf16.mxu1 %v7893_v23 }
 0x9c8   : > { %7314 = vmatmul.mubr.f32.vlgmr.msra.gmra.mrb[8].mxu1 %v5048_v13 }
 0x9c9   : > { %7916 = vmatpush3.bf16.xpose.msra.mxu1 %v7893_v23  ;;  %7320 = vmatprep.mubr.f32.mxu1 %v5038_v45 }
 0x9d0   : > { %7321 = vmatmul.mubr.f32.vlgmr.msra.gmra.mrb[8].mxu1 %v5048_v13 }
 0xa72   : > { %v7280_v25 = vpop.f32.mrb[6].mxu1 }
 0xa73   : > { %v4945_v33 = vpop.f32.mrb[7].mxu1 }
 0xaa3   : > { %v7322_v3 = vpop.f32.mrb[8].mxu1 }
 0xaa4   : > { %v5474_v19 = vsel %vm1792_vm1, -3.4028235e+38, %v7322_v3  ;;  %v5463_v31 = vpop.f32.mrb[9].mxu1 }
 0xaa5   : > { %v5473_v46 = vsel %vm1791_vm2, -3.4028235e+38, %v5463_v31  ;;  %v5478_v49 = vsel %vm2310_vm3, %v5474_v19, -inf }
 0xaa6   : > { %5479 = vmax.xlane.f32.xlu1 %v5478_v49  ;;  %v5475_v2 = vsel %vm2310_vm3, %v5473_v46, -inf }
 0xaa7   : > { %5476 = vmax.xlane.f32.xlu0 %v5475_v2 }
 0xab7   : > { %5499 = vrot.lane.b32.xlu1 %v9266_v15, %s8360_s13 }
 0xabb   : > { %6013 = vrot.lane.b32.xlu1 %v9350_v37, %s8360_s13 }
 0xabf   : > { %6015 = vrot.lane.b32.xlu1 %v9348_v42, %s8360_s13 }
 0xac3   : > { %6023 = vrot.lane.b32.xlu1 %v7280_v25, %s8359_s5 }
 0xb33   : > { %v5480_v4 = vpop.xlane.xlu1 %5479 }
 0xb34   : > { %v5482_v60 = vsub.f32 %v5474_v19, %v5480_v4  ;;  %v5477_v21 = vpop.xlane.xlu0 %5476 }
 0xb35   : > { %v5481_v7 = vsub.f32 %v5473_v46, %v5477_v21 }
 0xb36   : > { %v5485_v5 = vmul.f32 1.442695, %v5482_v60 }
 0xb37   : > { %v5483_v39 = vmul.f32 1.442695, %v5481_v7  ;;  %v5500_v42 = vpop.permute.xlu1 %5499 }
 0xb38   : > { %8148 = vpow2.f32 %v5485_v5  ;;  %v5513_v41 = vand.u32 4294901760, %v5500_v42 }
 0xb39   : > { %8150 = vpow2.f32 %v5483_v39 }
 0xb3a   : > { %v5605_v58 = vsub.f32 %v5500_v42, %v5513_v41 }
 0xb3b   : > { %v6014_v36 = vpop.permute.xlu1 %6013 }
 0xb3c   : > { %v5606_v55 = vand.u32 4294901760, %v5605_v58  ;;  %v6035_v6 = vsel %vm1793_vm0, %v9304_v12, %v6014_v36 }
 0xb3e   : > { %v5607_v1 = vsub.f32 %v5605_v58, %v5606_v55 }
 0xb3f   : > { %v6016_v17 = vpop.permute.xlu1 %6015 }
 0xb40   : > { %v5608_v45 = vand.u32 4294901760, %v5607_v1  ;;  %v6036_v20 = vsel %vm1793_vm0, %v9302_v16, %v6016_v17 }
 0xb42   : > { %v8149_v35 = vpop.eup %8148 }
 0xb43   : > { %v5490_v24 = vsel %vm2310_vm3, %v8149_v35, 0.0  ;;  %v8151_v15 = vpop.eup %8150  ;;  %v6024_v10 = vpop.permute.xlu1 %6023 }
 0xb44   : > { %5491 = vadd.xlane.f32.xlu0 %v5490_v24  ;;  %v5487_v37 = vsel %vm2310_vm3, %v8151_v15, 0.0  ;;  %v6039_v44 = vsel %vm6037_vm4, %v6036_v20, %v6024_v10 }
 0xb48   : > { %5488 = vadd.xlane.f32.xlu0 %v5487_v37 }
 0xb5e   : > { %5497 = vrot.lane.b32.xlu0 %v9269_v43, %s8360_s13 }
 0xb62   : > { %6021 = vrot.lane.b32.xlu0 %v4945_v33, %s8359_s5 }
 0xbd1   : > { %v5492_v28 = vpop.xlane.xlu0 %5491 }
 0xbd2   : > { %8152 = vrcp.f32 %v5492_v28 }
 0xbd5   : > { %v5489_v29 = vpop.xlane.xlu0 %5488 }
 0xbd6   : > { %8154 = vrcp.f32 %v5489_v29 }
 0xbd9   : > { %v5498_v30 = vpop.permute.xlu0 %5497 }
 0xbda   : > { %v5510_v40 = vand.u32 4294901760, %v5498_v30 }
 0xbdc   : > { %v8153_v47 = vpop.eup %8152  ;;  %v7917_v48 = vpack.c.bf16 %v5513_v41, %v5510_v40  ;;  %v5598_v34 = vsub.f32 %v5498_v30, %v5510_v40 }
 0xbdd   : > { %v5496_v50 = vmul.f32 %v8153_v47, %v8149_v35  ;;  %v6022_v57 = vpop.permute.xlu0 %6021 }
 0xbde   : > { %v5599_v22 = vand.u32 4294901760, %v5598_v34  ;;  %7918 = vmatprep.subr.bf16.mxu0 %v7917_v48  ;;  %v7925_v26 = vpack.c.bf16 %v5605_v58, %v5598_v34  ;;  %v6038_v25 = vsel %vm6037_vm4, %v6035_v6, %v6022_v57 }
 0xbdf   : > { %7920 = vmatpush3.bf16.msra.mxu0 %v7917_v48  ;;  %v5507_v43 = vsel %vm2310_vm3, %v5496_v50, 0 }
 0xbe0   : > { %v8155_v63 = vpop.eup %8154  ;;  %v5600_v52 = vsub.f32 %v5598_v34, %v5599_v22  ;;  %v5586_v59 = vand.u32 4294901760, %v5507_v43  ;;  %v7933_v51 = vpack.c.bf16 %v5606_v55, %v5599_v22 }
 0xbe1   : > { %v5495_v9 = vmul.f32 %v8155_v63, %v8151_v15 }
 0xbe2   : > { %v5601_v11 = vand.u32 4294901760, %v5600_v52  ;;  %v5587_v14 = vsub.f32 %v5507_v43, %v5586_v59 }
 0xbe3   : > { %v5504_v18 = vsel %vm2310_vm3, %v5495_v9, 0 }
 0xbe4   : > { %v7921_v62 = vpack.c.bf16 %v5608_v45, %v5601_v11  ;;  %v5576_v53 = vand.u32 4294901760, %v5504_v18  ;;  %v5588_v61 = vand.u32 4294901760, %v5587_v14 }
 0xbe6   : > { %7922 = vmatprep.subr.bf16.mxu0 %v7921_v62  ;;  %v5577_v32 = vsub.f32 %v5504_v18, %v5576_v53  ;;  %v5589_v13 = vsub.f32 %v5587_v14, %v5588_v61 }
 0xbe8   : > { %v5578_v27 = vand.u32 4294901760, %v5577_v32  ;;  %v5590_v56 = vand.u32 4294901760, %v5589_v13 }
 0xbea   : > { %v5579_v38 = vsub.f32 %v5577_v32, %v5578_v27 }
 0xbec   : > { %v5580_v23 = vand.u32 4294901760, %v5579_v38 }
 0xbee   : > { %7327 = vmatprep.mubr.f32.mxu0 %v5580_v23 }
 0xbef   : > { %7328 = vmatmul.mubr.f32.vlgmr.msra.gmra.mrb[8].mxu0 %v5590_v56 }
 0xbf0   : > { %7924 = vmatpush3.bf16.msra.mxu0 %v7921_v62  ;;  %7334 = vmatprep.mubr.f32.mxu0 %v5576_v53 }
 0xbf1   : > { %7926 = vmatprep.subr.bf16.mxu0 %v7925_v26 }
 0xbf7   : > { %7335 = vmatmul.mubr.f32.vlgmr.msra.gmra.mrb[8].mxu0 %v5586_v59 }
 0xbf8   : > { %7928 = vmatpush3.bf16.msra.mxu0 %v7925_v26  ;;  %7341 = vmatprep.mubr.f32.mxu0 %v5577_v32 }
 0xbf9   : > { %7930 = vmatprep.subr.bf16.mxu0 %v7917_v48 }
 0xbff   : > { %7342 = vmatmul.mubr.f32.vlgmr.msra.gmra.mrb[8].mxu0 %v5587_v14 }
 0xc00   : > { %7932 = vmatpush3.bf16.msra.mxu0 %v7917_v48  ;;  %7348 = vmatprep.mubr.f32.mxu0 %v5578_v27 }
 0xc01   : > { %7934 = vmatprep.subr.bf16.mxu0 %v7933_v51 }
 0xc07   : > { %7349 = vmatmul.mubr.f32.vlgmr.msra.gmra.mrb[8].mxu0 %v5588_v61 }
 0xc08   : > { %7936 = vmatpush3.bf16.msra.mxu0 %v7933_v51  ;;  %7355 = vmatprep.mubr.f32.mxu0 %v5576_v53 }
 0xc09   : > { %7938 = vmatprep.subr.bf16.mxu0 %v7917_v48 }
 0xc0f   : > { %7356 = vmatmul.mubr.f32.vlgmr.msra.gmra.mrb[8].mxu0 %v5586_v59 }
 0xc10   : > { %7940 = vmatpush3.bf16.msra.mxu0 %v7917_v48  ;;  %7362 = vmatprep.mubr.f32.mxu0 %v5576_v53 }
 0xc17   : > { %7363 = vmatmul.mubr.f32.vlgmr.msra.gmra.mrb[8].mxu0 %v5586_v59 }
 0xcea   : > { %v7364_v54 = vpop.f32.mrb[8].mxu0 }
 0xceb   : > { %6031 = vrot.lane.b32.xlu1 %v7364_v54, %s8358_s4  ;;  %v6001_v8 = vpop.f32.mrb[9].mxu0 }
 0xcec   : > { %6029 = vrot.lane.b32.xlu0 %v6001_v8, %s8358_s4 }
 0xd5d   : > { %v6032_v0 = vpop.permute.xlu1 %6031 }
 0xd5e   : > { %v6042_v33 = vsel %vm6040_vm5, %v6039_v44, %v6032_v0  ;;  %v6030_v3 = vpop.permute.xlu0 %6029 }
 0xd5f   : > { %6044 = vst [vmem:[%s338_s20 + $0x8] sm:$0xff] %v6042_v33  ;;  %v6041_v16 = vsel %vm6040_vm5, %v6038_v25, %v6030_v3 }
 0xd60   : > { %6043 = vst [vmem:[%s338_s20] sm:$0xff] %v6041_v16 }
 0xd61   : > { %8285 = shalt.err (!%p8282_p7)
}
 0xd62   : > { %s8286_s27 = scalar_lea.hbm %s9429_s18, 256  ;;  %s8290_s30 = scalar_lea.hbm %s9479_s6, 512 }
 0xd63   : > { %p8287_p9 = scmp.ne.s32.totalorder %s9429_s18, %s8286_s27  ;;  %p8291_p11 = scmp.lt.u32.totalorder %s9429_s18, %s9479_s6 }
 0xd64   : > { %p8292_p2 = scmp.lt.u32.totalorder %s8290_s30, %s8286_s27  ;;  %p8294_p1 = scmp.lt.u32.totalorder %s8286_s27, %s9429_s18 }
 0xd65   : > { %p8288_p0 = pnand %p8287_p9, %p9528_p13 }
 0xd66   : > { %p8293_p12 = por %p8292_p2, %p8291_p11 }
 0xd67   : > { %p8289_p8 = pneg %p8288_p0 }
 0xd68   : > { %p8295_p6 = por %p8294_p1, %p8293_p12 }
 0xd6a   : > { %p8296_p10 = pnand %p8295_p6, %p8289_p8 }
 0xd6c   : > { %8299 = shalt.err (!%p8296_p10)
}
 0xd6d   : > { %s8362_s13 = smov 128   ;;  %s8363_s20 = smov 8  }
 0xd6e   : > { %8053 = dma.vmem_to_hbm [thread:$0]  (%p9528_p13), %s9422_s16, 256, %s9429_s18, %s6046_s25, %s8362_s13, %s8362_s13, %s8363_s20  }
 0xd6f PF: > { %s6074_s17 = sand.u32 1, %s8338_s21   ;;  %p9529_p4 = scmp.ne.s32.totalorder %s9501_s28, 0 }
 0xd70   : > { %p9530_p5 = scmp.ge.s32.totalorder %s8350_s24, 2  ;;  %s6075_s0 = scalar_lea.sflag [#allocation4], %s6074_s17 }
 0xd72   : > { %p8070_p3 = pnand %p9530_p5, %p9529_p4 }
 0xd74   : > { %8333 = dma.done.wait (!%p8070_p3), %s6075_s0, 256  }
 0xd75   : > { %8335 = vsyncadd (!%p8070_p3), %s6075_s0, 4294967040  ;;  %p23_p7 = scmp.ge.s32.totalorder %s8515_s8, 4   ;;  %s9531_s21 = smov %s8342_s22 }
 0xd76   : > { %s9532_s22 = smov %s8346_s23  ;;  %s9533_s23 = smov %s8531_s11 }
 0xd77   : > { %s9534_s24 = smov %s8515_s8  ;;  %25 = sbr.rel (!%p23_p7) target bundleno = 12 (0xc), region = 110 }
 0xd7e   :  { %6080 = vsyncpa [#allocation3], 1 }
 0xd7f   :  { %6082 = vsyncpa [#allocation3 + $0x1], 1 }
 0xd80   :  { %6083 = vsyncpa [#allocation6], 1 }
 0xd81   :  { %6085 = vsyncpa [#allocation6 + $0x1], 1 }
 0xd82   :  { %6086 = vsyncpa [#allocation9], 1 }
 0xd83   :  { %6087 = vsyncpa [#allocation4], 1 }
 0xd84   :  { %6089 = vsyncpa [#allocation4 + $0x1], 1 }

</bundles_post_ra>
